<compile_context>
chip_gen: v7x
topology: tpu7x:2x2x1
jax: 0.10.0
libtpu: 0.0.40
codegen_flags: <defaults>
</compile_context>

<pallas_src>
import jax
import jax.numpy as jnp
from jax.experimental import pallas as pl
from jax.experimental.pallas import tpu as pltpu

_LANE = 128
_SUBLANE = 8


def _round_up(x, m):
    return ((x + m - 1) // m) * m


def _resnet_kernel(x_ref, w1_ref, b1_ref, w2_ref, b2_ref, wf_ref, bf_ref, out_ref):
    """Full forward for one row-tile.

    Refs (VMEM tiles):
      x_ref  : (TILE_N, Ep) bf16  padded input rows
      w1_ref : (L, Ep, Hp)  bf16  all layers' first Linear weights ((in, out) layout)
      b1_ref : (L, 1, Hp)   f32
      w2_ref : (L, Hp, Ep)  bf16
      b2_ref : (L, 1, Ep)   f32
      wf_ref : (1, Ep)      f32   final Linear weight as a row (zero-padded)
      bf_ref : (1, 1)       f32   final Linear bias
      out_ref: (TILE_N, 1)  f32   per-row scalar output
    """
    n_layers = w1_ref.shape[0]
    acc = x_ref[...].astype(jnp.float32)                      # f32 residual stream

    def layer(l, acc):
        # Linear(E -> H) + ReLU   (bf16 inputs, f32 MXU accumulation)
        h = jnp.dot(acc.astype(jnp.bfloat16), w1_ref[l],
                    preferred_element_type=jnp.float32) + b1_ref[l]
        h = jnp.maximum(h, 0.0)
        # Dropout(p=0.1) -> identity in eval mode.
        # Linear(H -> E) + residual
        y = jnp.dot(h.astype(jnp.bfloat16), w2_ref[l],
                    preferred_element_type=jnp.float32) + b2_ref[l]
        return acc + y

    acc = jax.lax.fori_loop(0, n_layers, layer, acc, unroll=(n_layers <= 8))

    # Final Linear(E -> 1) as VPU multiply + lane-sum (XLU); frees the MXU and
    # writes only one f32 per row instead of a 128-wide padded slab.
    scal = jnp.sum(acc * wf_ref[...], axis=-1, keepdims=True) + bf_ref[...]
    out_ref[...] = scal.astype(out_ref.dtype)


def _tile_padded_bytes(shape, itemsize):
    """VMEM footprint of a block, padding the last two dims to (8, 128)."""
    s = list(shape)
    if len(s) == 1:
        s = [1] + s
    s[-1] = _round_up(s[-1], _LANE)
    s[-2] = _round_up(s[-2], _SUBLANE)
    n = 1
    for d in s:
        n *= d
    return n * itemsize


@jax.jit
def resnet_forward(x, w1, b1, w2, b2, wf, bf):
    """x: [..., E] float32. Returns [..., 1] (eval-mode forward)."""
    lead_shape = x.shape[:-1]
    E = x.shape[-1]
    L, _, H = w1.shape

    x2d = x.reshape(-1, E).astype(jnp.float32)
    N = x2d.shape[0]

    Ep = _round_up(E, _LANE)
    Hp = _round_up(H, _LANE)

    # Row tile: multiple of 128 (fills the 256-wide MXU at >=256 rows), up to 512
    # rows; when N >= 256, force >= 2 grid steps so both v7x TensorCores get work.
    n_blocks = _round_up(max(N, 1), _LANE) // _LANE
    if n_blocks <= 1:
        tile_blocks = 1
    elif n_blocks < 8:
        tile_blocks = max(1, n_blocks // 2)
    else:
        tile_blocks = 4
    tile_n = tile_blocks * _LANE
    Np = _round_up(N, tile_n)
    grid = (Np // tile_n,)

    # Zero padding is numerically exact for Linear + ReLU + residual.
    xp = jnp.pad(x2d, ((0, Np - N), (0, Ep - E))).astype(jnp.bfloat16)
    w1p = jnp.pad(w1.astype(jnp.bfloat16), ((0, 0), (0, Ep - E), (0, Hp - H)))
    b1p = jnp.pad(b1.astype(jnp.float32), ((0, 0), (0, 0), (0, Hp - H)))
    w2p = jnp.pad(w2.astype(jnp.bfloat16), ((0, 0), (0, Hp - H), (0, Ep - E)))
    b2p = jnp.pad(b2.astype(jnp.float32), ((0, 0), (0, 0), (0, Ep - E)))
    wfp = jnp.pad(wf.astype(jnp.float32).T, ((0, 0), (0, Ep - E)))   # (1, Ep)
    bfp = bf.astype(jnp.float32).reshape(1, 1)

    # Scoped-VMEM limit from the actual resident footprint (double-buffered),
    # with headroom; never below the 32 MiB default, never above 128 MiB.
    # NOTE v5e cast-pressure: residual adds / bf16 casts are VPU work; larger
    # tile_n keeps the MXU the binding unit.
    resident = 2 * (
        _tile_padded_bytes((tile_n, Ep), 2)
        + _tile_padded_bytes((L, Ep, Hp), 2)
        + _tile_padded_bytes((L, 1, Hp), 4)
        + _tile_padded_bytes((L, Hp, Ep), 2)
        + _tile_padded_bytes((L, 1, Ep), 4)
        + _tile_padded_bytes((1, Ep), 4)
        + _tile_padded_bytes((1, 1), 4)
        + _tile_padded_bytes((tile_n, 1), 4)
    )
    vmem_limit = min(128 * 1024 * 1024,
                     max(32 * 1024 * 1024, int(1.5 * resident) + (4 << 20)))

    flops = 4 * Np * L * Ep * Hp + 2 * Np * Ep
    bytes_accessed = (xp.size * 2 + w1p.size * 2 + w2p.size * 2
                      + b1p.size * 4 + b2p.size * 4 + wfp.size * 4 + bfp.size * 4
                      + Np * 4)

    out_pad = pl.pallas_call(
        _resnet_kernel,
        out_shape=jax.ShapeDtypeStruct((Np, 1), jnp.float32),
        grid_spec=pltpu.PrefetchScalarGridSpec(
            num_scalar_prefetch=0,
            grid=grid,
            in_specs=[
                pl.BlockSpec((tile_n, Ep), lambda i: (i, 0)),     # x rows (tiled, bf16)
                pl.BlockSpec((L, Ep, Hp), lambda i: (0, 0, 0)),   # W1, all layers (bf16)
                pl.BlockSpec((L, 1, Hp), lambda i: (0, 0, 0)),    # b1 (f32)
                pl.BlockSpec((L, Hp, Ep), lambda i: (0, 0, 0)),   # W2 (bf16)
                pl.BlockSpec((L, 1, Ep), lambda i: (0, 0, 0)),    # b2 (f32)
                pl.BlockSpec((1, Ep), lambda i: (0, 0)),          # final weight row (f32)
                pl.BlockSpec((1, 1), lambda i: (0, 0)),           # final bias (f32)
            ],
            out_specs=pl.BlockSpec((tile_n, 1), lambda i: (i, 0)),
        ),
        compiler_params=pltpu.CompilerParams(
            dimension_semantics=("parallel",),   # rows independent -> megacore on v7x
            vmem_limit_bytes=vmem_limit,
        ),
        cost_estimate=pl.CostEstimate(
            flops=flops, transcendentals=0, bytes_accessed=bytes_accessed),
    )(xp, w1p, b1p, w2p, b2p, wfp, bfp)

    out2d = out_pad[:N]
    return out2d.reshape(*lead_shape, 1).astype(x.dtype)


def init_params(key, embed_dim, hidden_dim, n_layers):
    """Deterministic synthetic parameters (stored f32, (in, out) layout)."""
    keys = jax.random.split(key, 4 * n_layers + 2)
    w1 = jnp.stack([0.1 * jax.random.normal(keys[4 * i + 0],
                                            (embed_dim, hidden_dim), jnp.float32)
                    for i in range(n_layers)])
    b1 = jnp.stack([0.1 * jax.random.normal(keys[4 * i + 1],
                                            (1, hidden_dim), jnp.float32)
                    for i in range(n_layers)])
    w2 = jnp.stack([0.1 * jax.random.normal(keys[4 * i + 2],
                                            (hidden_dim, embed_dim), jnp.float32)
                    for i in range(n_layers)])
    b2 = jnp.stack([0.1 * jax.random.normal(keys[4 * i + 3],
                                            (1, embed_dim), jnp.float32)
                    for i in range(n_layers)])
    wf = 0.1 * jax.random.normal(keys[-2], (embed_dim, 1), jnp.float32)
    bf = 0.1 * jax.random.normal(keys[-1], (1, 1), jnp.float32)
    return w1, b1, w2, b2, wf, bf


def reference_forward_f32(x, w1, b1, w2, b2, wf, bf):
    """Pure-JAX f32 reference of the PyTorch forward (dropout = identity/eval)."""
    L = w1.shape[0]
    for i in range(L):
        h = jnp.maximum(x @ w1[i] + b1[i], 0.0)
        x = x + (h @ w2[i] + b2[i])
    return x @ wf + bf


def reference_forward_bf16(x, w1, b1, w2, b2, wf, bf):
    """Reference mirroring the kernel numerics: bf16 inputs / f32 accumulate,
    bf16-rounded input, f32 final projection."""
    acc = x.astype(jnp.bfloat16).astype(jnp.float32)
    L = w1.shape[0]
    for i in range(L):
        h = jnp.dot(acc.astype(jnp.bfloat16), w1[i].astype(jnp.bfloat16),
                    preferred_element_type=jnp.float32) + b1[i]
        h = jnp.maximum(h, 0.0)
        acc = acc + jnp.dot(h.astype(jnp.bfloat16), w2[i].astype(jnp.bfloat16),
                            preferred_element_type=jnp.float32) + b2[i]
    return acc @ wf + bf


if __name__ == "__main__":
    # Small shapes consistent with the module: batch=2, seq=8, embed_dim=32, hidden_dim=64
    batch, seq = 2, 8
    embed_dim, hidden_dim, n_layers = 32, 64, 6

    key = jax.random.PRNGKey(0)
    kx, kp = jax.random.split(key)
    x = jax.random.normal(kx, (batch, seq, embed_dim), jnp.float32)
    params = init_params(kp, embed_dim, hidden_dim, n_layers)

    out = jax.block_until_ready(resnet_forward(x, *params))
    assert out.shape == (batch, seq, 1), out.shape

    ref16 = reference_forward_bf16(x, *params)   # same numerics as the kernel
    ref32 = reference_forward_f32(x, *params)    # exact PyTorch-eval semantics
    assert jnp.allclose(out, ref16, atol=3e-3, rtol=3e-3), (
        float(jnp.max(jnp.abs(out - ref16))))
    assert jnp.allclose(out, ref32, atol=5e-2, rtol=5e-2), (
        float(jnp.max(jnp.abs(out - ref32))))

    print("KERNEL_OK")
</pallas_src>

<mosaic_0001>
module attributes {stable_mosaic.version = 11 : i64} {
  func.func @_resnet_kernel(%arg0: i32, %arg1: memref<128x128xbf16, #tpu.memory_space<vmem>>, %arg2: memref<6x128x128xbf16, #tpu.memory_space<vmem>>, %arg3: memref<6x1x128xf32, #tpu.memory_space<vmem>>, %arg4: memref<6x128x128xbf16, #tpu.memory_space<vmem>>, %arg5: memref<6x1x128xf32, #tpu.memory_space<vmem>>, %arg6: memref<1x128xf32, #tpu.memory_space<vmem>>, %arg7: memref<1x1xf32, #tpu.memory_space<vmem>>, %arg8: memref<128x1xf32, #tpu.memory_space<vmem>>) attributes {dimension_semantics = [#tpu.dimension_semantics<parallel>], iteration_bounds = array<i64: 1>, scalar_prefetch = 0 : i64, scratch_operands = 0 : i64, tpu.core_type = #tpu.core_type<tc>, window_params = [{transform_indices = @transform_0, window_bounds = array<i64: 128, 128>}, {pipeline_mode = #tpu.pipeline_mode<synchronous>, transform_indices = @transform_1, window_bounds = array<i64: 6, 128, 128>}, {pipeline_mode = #tpu.pipeline_mode<synchronous>, transform_indices = @transform_2, window_bounds = array<i64: 6, 1, 128>}, {pipeline_mode = #tpu.pipeline_mode<synchronous>, transform_indices = @transform_3, window_bounds = array<i64: 6, 128, 128>}, {pipeline_mode = #tpu.pipeline_mode<synchronous>, transform_indices = @transform_4, window_bounds = array<i64: 6, 1, 128>}, {pipeline_mode = #tpu.pipeline_mode<synchronous>, transform_indices = @transform_5, window_bounds = array<i64: 1, 128>}, {pipeline_mode = #tpu.pipeline_mode<synchronous>, transform_indices = @transform_6, window_bounds = array<i64: 1, 1>}, {transform_indices = @transform_7, window_bounds = array<i64: 128, 1>}]} {
    %c0 = arith.constant 0 : index
    %c0_0 = arith.constant 0 : index
    %0 = vector.load %arg1[%c0, %c0_0] : memref<128x128xbf16, #tpu.memory_space<vmem>>, vector<128x128xbf16>
    %1 = arith.extf %0 : vector<128x128xbf16> to vector<128x128xf32>
    %c0_i32 = arith.constant 0 : i32
    %2 = arith.truncf %1 : vector<128x128xf32> to vector<128x128xbf16>
    %3 = arith.index_cast %c0_i32 : i32 to index
    %c0_1 = arith.constant 0 : index
    %c0_2 = arith.constant 0 : index
    %4 = vector.load %arg2[%3, %c0_1, %c0_2] : memref<6x128x128xbf16, #tpu.memory_space<vmem>>, vector<1x128x128xbf16>
    %5 = vector.shape_cast %4 : vector<1x128x128xbf16> to vector<128x128xbf16>
    %cst = arith.constant dense<0.000000e+00> : vector<128x128xf32>
    %6 = tpu.matmul %2, %5, %cst {dimension_numbers = #tpu.dot_dimension_numbers<[1], [0], [0], [1], [0, 0, 1, 1], [], []>} : vector<128x128xbf16>, vector<128x128xbf16>, vector<128x128xf32> -> vector<128x128xf32>
    %7 = arith.index_cast %c0_i32 : i32 to index
    %c0_3 = arith.constant 0 : index
    %c0_4 = arith.constant 0 : index
    %8 = vector.load %arg3[%7, %c0_3, %c0_4] : memref<6x1x128xf32, #tpu.memory_space<vmem>>, vector<1x1x128xf32>
    %9 = vector.shape_cast %8 : vector<1x1x128xf32> to vector<1x128xf32>
    %10 = vector.broadcast %9 : vector<1x128xf32> to vector<128x128xf32>
    %11 = arith.addf %6, %10 : vector<128x128xf32>
    %cst_5 = arith.constant 0.000000e+00 : f32
    %12 = vector.broadcast %cst_5 : f32 to vector<128x128xf32>
    %13 = arith.maximumf %11, %12 : vector<128x128xf32>
    %14 = arith.truncf %13 : vector<128x128xf32> to vector<128x128xbf16>
    %15 = arith.index_cast %c0_i32 : i32 to index
    %c0_6 = arith.constant 0 : index
    %c0_7 = arith.constant 0 : index
    %16 = vector.load %arg4[%15, %c0_6, %c0_7] : memref<6x128x128xbf16, #tpu.memory_space<vmem>>, vector<1x128x128xbf16>
    %17 = vector.shape_cast %16 : vector<1x128x128xbf16> to vector<128x128xbf16>
    %cst_8 = arith.constant dense<0.000000e+00> : vector<128x128xf32>
    %18 = tpu.matmul %14, %17, %cst_8 {dimension_numbers = #tpu.dot_dimension_numbers<[1], [0], [0], [1], [0, 0, 1, 1], [], []>} : vector<128x128xbf16>, vector<128x128xbf16>, vector<128x128xf32> -> vector<128x128xf32>
    %19 = arith.index_cast %c0_i32 : i32 to index
    %c0_9 = arith.constant 0 : index
    %c0_10 = arith.constant 0 : index
    %20 = vector.load %arg5[%19, %c0_9, %c0_10] : memref<6x1x128xf32, #tpu.memory_space<vmem>>, vector<1x1x128xf32>
    %21 = vector.shape_cast %20 : vector<1x1x128xf32> to vector<1x128xf32>
    %22 = vector.broadcast %21 : vector<1x128xf32> to vector<128x128xf32>
    %23 = arith.addf %18, %22 : vector<128x128xf32>
    %24 = arith.addf %1, %23 : vector<128x128xf32>
    %c1_i32 = arith.constant 1 : i32
    %25 = arith.truncf %24 : vector<128x128xf32> to vector<128x128xbf16>
    %26 = arith.index_cast %c1_i32 : i32 to index
    %c0_11 = arith.constant 0 : index
    %c0_12 = arith.constant 0 : index
    %27 = vector.load %arg2[%26, %c0_11, %c0_12] : memref<6x128x128xbf16, #tpu.memory_space<vmem>>, vector<1x128x128xbf16>
    %28 = vector.shape_cast %27 : vector<1x128x128xbf16> to vector<128x128xbf16>
    %cst_13 = arith.constant dense<0.000000e+00> : vector<128x128xf32>
    %29 = tpu.matmul %25, %28, %cst_13 {dimension_numbers = #tpu.dot_dimension_numbers<[1], [0], [0], [1], [0, 0, 1, 1], [], []>} : vector<128x128xbf16>, vector<128x128xbf16>, vector<128x128xf32> -> vector<128x128xf32>
    %30 = arith.index_cast %c1_i32 : i32 to index
    %c0_14 = arith.constant 0 : index
    %c0_15 = arith.constant 0 : index
    %31 = vector.load %arg3[%30, %c0_14, %c0_15] : memref<6x1x128xf32, #tpu.memory_space<vmem>>, vector<1x1x128xf32>
    %32 = vector.shape_cast %31 : vector<1x1x128xf32> to vector<1x128xf32>
    %33 = vector.broadcast %32 : vector<1x128xf32> to vector<128x128xf32>
    %34 = arith.addf %29, %33 : vector<128x128xf32>
    %cst_16 = arith.constant 0.000000e+00 : f32
    %35 = vector.broadcast %cst_16 : f32 to vector<128x128xf32>
    %36 = arith.maximumf %34, %35 : vector<128x128xf32>
    %37 = arith.truncf %36 : vector<128x128xf32> to vector<128x128xbf16>
    %38 = arith.index_cast %c1_i32 : i32 to index
    %c0_17 = arith.constant 0 : index
    %c0_18 = arith.constant 0 : index
    %39 = vector.load %arg4[%38, %c0_17, %c0_18] : memref<6x128x128xbf16, #tpu.memory_space<vmem>>, vector<1x128x128xbf16>
    %40 = vector.shape_cast %39 : vector<1x128x128xbf16> to vector<128x128xbf16>
    %cst_19 = arith.constant dense<0.000000e+00> : vector<128x128xf32>
    %41 = tpu.matmul %37, %40, %cst_19 {dimension_numbers = #tpu.dot_dimension_numbers<[1], [0], [0], [1], [0, 0, 1, 1], [], []>} : vector<128x128xbf16>, vector<128x128xbf16>, vector<128x128xf32> -> vector<128x128xf32>
    %42 = arith.index_cast %c1_i32 : i32 to index
    %c0_20 = arith.constant 0 : index
    %c0_21 = arith.constant 0 : index
    %43 = vector.load %arg5[%42, %c0_20, %c0_21] : memref<6x1x128xf32, #tpu.memory_space<vmem>>, vector<1x1x128xf32>
    %44 = vector.shape_cast %43 : vector<1x1x128xf32> to vector<1x128xf32>
    %45 = vector.broadcast %44 : vector<1x128xf32> to vector<128x128xf32>
    %46 = arith.addf %41, %45 : vector<128x128xf32>
    %47 = arith.addf %24, %46 : vector<128x128xf32>
    %c2_i32 = arith.constant 2 : i32
    %48 = arith.truncf %47 : vector<128x128xf32> to vector<128x128xbf16>
    %49 = arith.index_cast %c2_i32 : i32 to index
    %c0_22 = arith.constant 0 : index
    %c0_23 = arith.constant 0 : index
    %50 = vector.load %arg2[%49, %c0_22, %c0_23] : memref<6x128x128xbf16, #tpu.memory_space<vmem>>, vector<1x128x128xbf16>
    %51 = vector.shape_cast %50 : vector<1x128x128xbf16> to vector<128x128xbf16>
    %cst_24 = arith.constant dense<0.000000e+00> : vector<128x128xf32>
    %52 = tpu.matmul %48, %51, %cst_24 {dimension_numbers = #tpu.dot_dimension_numbers<[1], [0], [0], [1], [0, 0, 1, 1], [], []>} : vector<128x128xbf16>, vector<128x128xbf16>, vector<128x128xf32> -> vector<128x128xf32>
    %53 = arith.index_cast %c2_i32 : i32 to index
    %c0_25 = arith.constant 0 : index
    %c0_26 = arith.constant 0 : index
    %54 = vector.load %arg3[%53, %c0_25, %c0_26] : memref<6x1x128xf32, #tpu.memory_space<vmem>>, vector<1x1x128xf32>
    %55 = vector.shape_cast %54 : vector<1x1x128xf32> to vector<1x128xf32>
    %56 = vector.broadcast %55 : vector<1x128xf32> to vector<128x128xf32>
    %57 = arith.addf %52, %56 : vector<128x128xf32>
    %cst_27 = arith.constant 0.000000e+00 : f32
    %58 = vector.broadcast %cst_27 : f32 to vector<128x128xf32>
    %59 = arith.maximumf %57, %58 : vector<128x128xf32>
    %60 = arith.truncf %59 : vector<128x128xf32> to vector<128x128xbf16>
    %61 = arith.index_cast %c2_i32 : i32 to index
    %c0_28 = arith.constant 0 : index
    %c0_29 = arith.constant 0 : index
    %62 = vector.load %arg4[%61, %c0_28, %c0_29] : memref<6x128x128xbf16, #tpu.memory_space<vmem>>, vector<1x128x128xbf16>
    %63 = vector.shape_cast %62 : vector<1x128x128xbf16> to vector<128x128xbf16>
    %cst_30 = arith.constant dense<0.000000e+00> : vector<128x128xf32>
    %64 = tpu.matmul %60, %63, %cst_30 {dimension_numbers = #tpu.dot_dimension_numbers<[1], [0], [0], [1], [0, 0, 1, 1], [], []>} : vector<128x128xbf16>, vector<128x128xbf16>, vector<128x128xf32> -> vector<128x128xf32>
    %65 = arith.index_cast %c2_i32 : i32 to index
    %c0_31 = arith.constant 0 : index
    %c0_32 = arith.constant 0 : index
    %66 = vector.load %arg5[%65, %c0_31, %c0_32] : memref<6x1x128xf32, #tpu.memory_space<vmem>>, vector<1x1x128xf32>
    %67 = vector.shape_cast %66 : vector<1x1x128xf32> to vector<1x128xf32>
    %68 = vector.broadcast %67 : vector<1x128xf32> to vector<128x128xf32>
    %69 = arith.addf %64, %68 : vector<128x128xf32>
    %70 = arith.addf %47, %69 : vector<128x128xf32>
    %c3_i32 = arith.constant 3 : i32
    %71 = arith.truncf %70 : vector<128x128xf32> to vector<128x128xbf16>
    %72 = arith.index_cast %c3_i32 : i32 to index
    %c0_33 = arith.constant 0 : index
    %c0_34 = arith.constant 0 : index
    %73 = vector.load %arg2[%72, %c0_33, %c0_34] : memref<6x128x128xbf16, #tpu.memory_space<vmem>>, vector<1x128x128xbf16>
    %74 = vector.shape_cast %73 : vector<1x128x128xbf16> to vector<128x128xbf16>
    %cst_35 = arith.constant dense<0.000000e+00> : vector<128x128xf32>
    %75 = tpu.matmul %71, %74, %cst_35 {dimension_numbers = #tpu.dot_dimension_numbers<[1], [0], [0], [1], [0, 0, 1, 1], [], []>} : vector<128x128xbf16>, vector<128x128xbf16>, vector<128x128xf32> -> vector<128x128xf32>
    %76 = arith.index_cast %c3_i32 : i32 to index
    %c0_36 = arith.constant 0 : index
    %c0_37 = arith.constant 0 : index
    %77 = vector.load %arg3[%76, %c0_36, %c0_37] : memref<6x1x128xf32, #tpu.memory_space<vmem>>, vector<1x1x128xf32>
    %78 = vector.shape_cast %77 : vector<1x1x128xf32> to vector<1x128xf32>
    %79 = vector.broadcast %78 : vector<1x128xf32> to vector<128x128xf32>
    %80 = arith.addf %75, %79 : vector<128x128xf32>
    %cst_38 = arith.constant 0.000000e+00 : f32
    %81 = vector.broadcast %cst_38 : f32 to vector<128x128xf32>
    %82 = arith.maximumf %80, %81 : vector<128x128xf32>
    %83 = arith.truncf %82 : vector<128x128xf32> to vector<128x128xbf16>
    %84 = arith.index_cast %c3_i32 : i32 to index
    %c0_39 = arith.constant 0 : index
    %c0_40 = arith.constant 0 : index
    %85 = vector.load %arg4[%84, %c0_39, %c0_40] : memref<6x128x128xbf16, #tpu.memory_space<vmem>>, vector<1x128x128xbf16>
    %86 = vector.shape_cast %85 : vector<1x128x128xbf16> to vector<128x128xbf16>
    %cst_41 = arith.constant dense<0.000000e+00> : vector<128x128xf32>
    %87 = tpu.matmul %83, %86, %cst_41 {dimension_numbers = #tpu.dot_dimension_numbers<[1], [0], [0], [1], [0, 0, 1, 1], [], []>} : vector<128x128xbf16>, vector<128x128xbf16>, vector<128x128xf32> -> vector<128x128xf32>
    %88 = arith.index_cast %c3_i32 : i32 to index
    %c0_42 = arith.constant 0 : index
    %c0_43 = arith.constant 0 : index
    %89 = vector.load %arg5[%88, %c0_42, %c0_43] : memref<6x1x128xf32, #tpu.memory_space<vmem>>, vector<1x1x128xf32>
    %90 = vector.shape_cast %89 : vector<1x1x128xf32> to vector<1x128xf32>
    %91 = vector.broadcast %90 : vector<1x128xf32> to vector<128x128xf32>
    %92 = arith.addf %87, %91 : vector<128x128xf32>
    %93 = arith.addf %70, %92 : vector<128x128xf32>
    %c4_i32 = arith.constant 4 : i32
    %94 = arith.truncf %93 : vector<128x128xf32> to vector<128x128xbf16>
    %95 = arith.index_cast %c4_i32 : i32 to index
    %c0_44 = arith.constant 0 : index
    %c0_45 = arith.constant 0 : index
    %96 = vector.load %arg2[%95, %c0_44, %c0_45] : memref<6x128x128xbf16, #tpu.memory_space<vmem>>, vector<1x128x128xbf16>
    %97 = vector.shape_cast %96 : vector<1x128x128xbf16> to vector<128x128xbf16>
    %cst_46 = arith.constant dense<0.000000e+00> : vector<128x128xf32>
    %98 = tpu.matmul %94, %97, %cst_46 {dimension_numbers = #tpu.dot_dimension_numbers<[1], [0], [0], [1], [0, 0, 1, 1], [], []>} : vector<128x128xbf16>, vector<128x128xbf16>, vector<128x128xf32> -> vector<128x128xf32>
    %99 = arith.index_cast %c4_i32 : i32 to index
    %c0_47 = arith.constant 0 : index
    %c0_48 = arith.constant 0 : index
    %100 = vector.load %arg3[%99, %c0_47, %c0_48] : memref<6x1x128xf32, #tpu.memory_space<vmem>>, vector<1x1x128xf32>
    %101 = vector.shape_cast %100 : vector<1x1x128xf32> to vector<1x128xf32>
    %102 = vector.broadcast %101 : vector<1x128xf32> to vector<128x128xf32>
    %103 = arith.addf %98, %102 : vector<128x128xf32>
    %cst_49 = arith.constant 0.000000e+00 : f32
    %104 = vector.broadcast %cst_49 : f32 to vector<128x128xf32>
    %105 = arith.maximumf %103, %104 : vector<128x128xf32>
    %106 = arith.truncf %105 : vector<128x128xf32> to vector<128x128xbf16>
    %107 = arith.index_cast %c4_i32 : i32 to index
    %c0_50 = arith.constant 0 : index
    %c0_51 = arith.constant 0 : index
    %108 = vector.load %arg4[%107, %c0_50, %c0_51] : memref<6x128x128xbf16, #tpu.memory_space<vmem>>, vector<1x128x128xbf16>
    %109 = vector.shape_cast %108 : vector<1x128x128xbf16> to vector<128x128xbf16>
    %cst_52 = arith.constant dense<0.000000e+00> : vector<128x128xf32>
    %110 = tpu.matmul %106, %109, %cst_52 {dimension_numbers = #tpu.dot_dimension_numbers<[1], [0], [0], [1], [0, 0, 1, 1], [], []>} : vector<128x128xbf16>, vector<128x128xbf16>, vector<128x128xf32> -> vector<128x128xf32>
    %111 = arith.index_cast %c4_i32 : i32 to index
    %c0_53 = arith.constant 0 : index
    %c0_54 = arith.constant 0 : index
    %112 = vector.load %arg5[%111, %c0_53, %c0_54] : memref<6x1x128xf32, #tpu.memory_space<vmem>>, vector<1x1x128xf32>
    %113 = vector.shape_cast %112 : vector<1x1x128xf32> to vector<1x128xf32>
    %114 = vector.broadcast %113 : vector<1x128xf32> to vector<128x128xf32>
    %115 = arith.addf %110, %114 : vector<128x128xf32>
    %116 = arith.addf %93, %115 : vector<128x128xf32>
    %c5_i32 = arith.constant 5 : i32
    %117 = arith.truncf %116 : vector<128x128xf32> to vector<128x128xbf16>
    %118 = arith.index_cast %c5_i32 : i32 to index
    %c0_55 = arith.constant 0 : index
    %c0_56 = arith.constant 0 : index
    %119 = vector.load %arg2[%118, %c0_55, %c0_56] : memref<6x128x128xbf16, #tpu.memory_space<vmem>>, vector<1x128x128xbf16>
    %120 = vector.shape_cast %119 : vector<1x128x128xbf16> to vector<128x128xbf16>
    %cst_57 = arith.constant dense<0.000000e+00> : vector<128x128xf32>
    %121 = tpu.matmul %117, %120, %cst_57 {dimension_numbers = #tpu.dot_dimension_numbers<[1], [0], [0], [1], [0, 0, 1, 1], [], []>} : vector<128x128xbf16>, vector<128x128xbf16>, vector<128x128xf32> -> vector<128x128xf32>
    %122 = arith.index_cast %c5_i32 : i32 to index
    %c0_58 = arith.constant 0 : index
    %c0_59 = arith.constant 0 : index
    %123 = vector.load %arg3[%122, %c0_58, %c0_59] : memref<6x1x128xf32, #tpu.memory_space<vmem>>, vector<1x1x128xf32>
    %124 = vector.shape_cast %123 : vector<1x1x128xf32> to vector<1x128xf32>
    %125 = vector.broadcast %124 : vector<1x128xf32> to vector<128x128xf32>
    %126 = arith.addf %121, %125 : vector<128x128xf32>
    %cst_60 = arith.constant 0.000000e+00 : f32
    %127 = vector.broadcast %cst_60 : f32 to vector<128x128xf32>
    %128 = arith.maximumf %126, %127 : vector<128x128xf32>
    %129 = arith.truncf %128 : vector<128x128xf32> to vector<128x128xbf16>
    %130 = arith.index_cast %c5_i32 : i32 to index
    %c0_61 = arith.constant 0 : index
    %c0_62 = arith.constant 0 : index
    %131 = vector.load %arg4[%130, %c0_61, %c0_62] : memref<6x128x128xbf16, #tpu.memory_space<vmem>>, vector<1x128x128xbf16>
    %132 = vector.shape_cast %131 : vector<1x128x128xbf16> to vector<128x128xbf16>
    %cst_63 = arith.constant dense<0.000000e+00> : vector<128x128xf32>
    %133 = tpu.matmul %129, %132, %cst_63 {dimension_numbers = #tpu.dot_dimension_numbers<[1], [0], [0], [1], [0, 0, 1, 1], [], []>} : vector<128x128xbf16>, vector<128x128xbf16>, vector<128x128xf32> -> vector<128x128xf32>
    %134 = arith.index_cast %c5_i32 : i32 to index
    %c0_64 = arith.constant 0 : index
    %c0_65 = arith.constant 0 : index
    %135 = vector.load %arg5[%134, %c0_64, %c0_65] : memref<6x1x128xf32, #tpu.memory_space<vmem>>, vector<1x1x128xf32>
    %136 = vector.shape_cast %135 : vector<1x1x128xf32> to vector<1x128xf32>
    %137 = vector.broadcast %136 : vector<1x128xf32> to vector<128x128xf32>
    %138 = arith.addf %133, %137 : vector<128x128xf32>
    %139 = arith.addf %116, %138 : vector<128x128xf32>
    %c6_i32 = arith.constant 6 : i32
    %c0_66 = arith.constant 0 : index
    %c0_67 = arith.constant 0 : index
    %140 = vector.load %arg6[%c0_66, %c0_67] : memref<1x128xf32, #tpu.memory_space<vmem>>, vector<1x128xf32>
    %141 = vector.broadcast %140 : vector<1x128xf32> to vector<128x128xf32>
    %142 = arith.mulf %139, %141 : vector<128x128xf32>
    %cst_68 = arith.constant dense<0.000000e+00> : vector<128xf32>
    %143 = vector.multi_reduction <add>, %142, %cst_68 [1] : vector<128x128xf32> to vector<128xf32>
    %144 = vector.shape_cast %143 : vector<128xf32> to vector<128x1xf32>
    %c0_69 = arith.constant 0 : index
    %c0_70 = arith.constant 0 : index
    %145 = vector.load %arg7[%c0_69, %c0_70] : memref<1x1xf32, #tpu.memory_space<vmem>>, vector<1x1xf32>
    %146 = vector.broadcast %145 : vector<1x1xf32> to vector<128x1xf32>
    %147 = arith.addf %144, %146 : vector<128x1xf32>
    %c0_71 = arith.constant 0 : index
    %c0_72 = arith.constant 0 : index
    %148 = vector.load %arg8[%c0_71, %c0_72] : memref<128x1xf32, #tpu.memory_space<vmem>>, vector<128x1xf32>
    tpu.vector_store %arg8[%c0_71, %c0_72], %147 {strides = array<i32>} : memref<128x1xf32, #tpu.memory_space<vmem>>, vector<128x1xf32>,
    return
  }
  func.func @transform_0(%arg0: i32) -> (i32, i32) {
    %c0_i32 = arith.constant 0 : i32
    %c0_i32_0 = arith.constant 0 : i32
    return %arg0, %c0_i32 : i32, i32
  }
  func.func @transform_1(%arg0: i32) -> (i32, i32, i32) {
    %c0_i32 = arith.constant 0 : i32
    %c0_i32_0 = arith.constant 0 : i32
    %c0_i32_1 = arith.constant 0 : i32
    %c0_i32_2 = arith.constant 0 : i32
    return %c0_i32, %c0_i32_0, %c0_i32_1 : i32, i32, i32
  }
  func.func @transform_2(%arg0: i32) -> (i32, i32, i32) {
    %c0_i32 = arith.constant 0 : i32
    %c0_i32_0 = arith.constant 0 : i32
    %c0_i32_1 = arith.constant 0 : i32
    %c0_i32_2 = arith.constant 0 : i32
    return %c0_i32, %c0_i32_0, %c0_i32_1 : i32, i32, i32
  }
  func.func @transform_3(%arg0: i32) -> (i32, i32, i32) {
    %c0_i32 = arith.constant 0 : i32
    %c0_i32_0 = arith.constant 0 : i32
    %c0_i32_1 = arith.constant 0 : i32
    %c0_i32_2 = arith.constant 0 : i32
    return %c0_i32, %c0_i32_0, %c0_i32_1 : i32, i32, i32
  }
  func.func @transform_4(%arg0: i32) -> (i32, i32, i32) {
    %c0_i32 = arith.constant 0 : i32
    %c0_i32_0 = arith.constant 0 : i32
    %c0_i32_1 = arith.constant 0 : i32
    %c0_i32_2 = arith.constant 0 : i32
    return %c0_i32, %c0_i32_0, %c0_i32_1 : i32, i32, i32
  }
  func.func @transform_5(%arg0: i32) -> (i32, i32) {
    %c0_i32 = arith.constant 0 : i32
    %c0_i32_0 = arith.constant 0 : i32
    %c0_i32_1 = arith.constant 0 : i32
    return %c0_i32, %c0_i32_0 : i32, i32
  }
  func.func @transform_6(%arg0: i32) -> (i32, i32) {
    %c0_i32 = arith.constant 0 : i32
    %c0_i32_0 = arith.constant 0 : i32
    %c0_i32_1 = arith.constant 0 : i32
    return %c0_i32, %c0_i32_0 : i32, i32
  }
  func.func @transform_7(%arg0: i32) -> (i32, i32) {
    %c0_i32 = arith.constant 0 : i32
    %c0_i32_0 = arith.constant 0 : i32
    return %arg0, %c0_i32 : i32, i32
  }
}

</mosaic_0001>

<bundles_post_ra>
// kernel: resnet_forward.1
= control target key start
LH: loop header
LB: loop body
LE: loop exit
PB: predicated region body
PF: predicated region fallthrough
CT: control target
= control target key end

     0   :  { %vm2503_vm0 = vcmask 7168   ;;  %s4372_s1 = inlined_call_operand.vmem [shape: bf16[6,128,128], index: 1, kind: input, shape index: {}]   ;;  %s4373_s0 = inlined_call_operand.vmem [shape: bf16[128,128], index: 0, kind: input, shape index: {}]   ;;  %s4374_s3 = inlined_call_operand.vmem [shape: bf16[6,128,128], index: 3, kind: input, shape index: {}]   ;;  %s4375_s2 = inlined_call_operand.vmem [shape: f32[6,1,128], index: 2, kind: input, shape index: {}]   ;;  %s4376_s4 = inlined_call_operand.vmem [shape: f32[6,1,128], index: 4, kind: input, shape index: {}]   ;;  %s4377_s6 = inlined_call_operand.<no memory space> [shape: f32[1,1], index: 6, kind: input, shape index: {}]   ;;  %s4378_s5 = inlined_call_operand.vmem [shape: f32[1,128], index: 5, kind: input, shape index: {}]   ;;  %s4379_s7 = inlined_call_operand.vmem [shape: f32[128,1], index: 7, kind: output, shape index: {}]  }
   0x1   :  { %v3388_v0 = vld [vmem:[%s4372_s1] sm:$0xff]   ;;  %v3389_v1 = vld [vmem:[%s4372_s1 + $0x8] sm:$0xff]   ;;  %v3390_v2 = vld [vmem:[%s4372_s1 + $0x10] sm:$0xff]  }
   0x2   :  { %3004 = vmatprep.subr.bf16.mxu0 %v3388_v0  ;;  %v3391_v3 = vld [vmem:[%s4372_s1 + $0x18] sm:$0xff]   ;;  %v3555_v4 = vld [vmem:[%s4373_s0] sm:$0xff]   ;;  %v3405_v7 = vld [vmem:[%s4374_s3 + $0x8] sm:$0xff]  }
   0x3   :  { %3005 = vmatpush3.bf16.msra.mxu0 %v3388_v0  ;;  %v3392_v5 = vld [vmem:[%s4372_s1 + $0x20] sm:$0xff]   ;;  %3020 = vmatprep.mubr.bf16.mxu0 %v3555_v4  ;;  %v3406_v8 = vld [vmem:[%s4374_s3 + $0x10] sm:$0xff]   ;;  %v3393_v9 = vld [vmem:[%s4372_s1 + $0x28] sm:$0xff]  }
   0x4   :  { %3006 = vmatprep.subr.bf16.mxu0 %v3389_v1  ;;  %v3404_v6 = vld [vmem:[%s4374_s3] sm:$0xff]   ;;  %v3407_v10 = vld [vmem:[%s4374_s3 + $0x18] sm:$0xff]   ;;  %v3394_v11 = vld [vmem:[%s4372_s1 + $0x30] sm:$0xff]  }
   0x5   :  { %3036 = vmatprep.subr.bf16.mxu1 %v3404_v6  ;;  %v3408_v12 = vld [vmem:[%s4374_s3 + $0x20] sm:$0xff]   ;;  %v3395_v13 = vld [vmem:[%s4372_s1 + $0x38] sm:$0xff]   ;;  %v3588_v14 = vld [vmem:[%s4373_s0 + $0x8] sm:$0xff]  }
   0x6   :  { %3037 = vmatpush3.bf16.msra.mxu1 %v3404_v6  ;;  %v3409_v15 = vld [vmem:[%s4374_s3 + $0x28] sm:$0xff]   ;;  %v3596_v16 = vld [vmem:[%s4373_s0 + $0x10] sm:$0xff]   ;;  %v3601_v17 = vld [vmem:[%s4373_s0 + $0x18] sm:$0xff]  }
   0x7   :  { %3007 = vmatpush3.bf16.msra.mxu0 %v3389_v1  ;;  %3038 = vmatprep.subr.bf16.mxu1 %v3405_v7  ;;  %v3607_v18 = vld [vmem:[%s4373_s0 + $0x20] sm:$0xff]   ;;  %v3613_v19 = vld [vmem:[%s4373_s0 + $0x28] sm:$0xff]   ;;  %v3619_v20 = vld [vmem:[%s4373_s0 + $0x30] sm:$0xff]  }
   0x8   :  { %3008 = vmatprep.subr.bf16.mxu0 %v3390_v2  ;;  %v3625_v21 = vld [vmem:[%s4373_s0 + $0x38] sm:$0xff]   ;;  %v3410_v22 = vld [vmem:[%s4374_s3 + $0x30] sm:$0xff]   ;;  %v3412_v24 = vld [vmem:[%s4372_s1 + $0x40] sm:$0xff]  }
   0x9   :  { %v3411_v23 = vld [vmem:[%s4374_s3 + $0x38] sm:$0xff]   ;;  %v3413_v25 = vld [vmem:[%s4372_s1 + $0x48] sm:$0xff]   ;;  %v3414_v26 = vld [vmem:[%s4372_s1 + $0x50] sm:$0xff]  }
   0xa   :  { %3039 = vmatpush3.bf16.msra.mxu1 %v3405_v7  ;;  %v3415_v27 = vld [vmem:[%s4372_s1 + $0x58] sm:$0xff]   ;;  %v3416_v28 = vld [vmem:[%s4372_s1 + $0x60] sm:$0xff]   ;;  %v3417_v29 = vld [vmem:[%s4372_s1 + $0x68] sm:$0xff]  }
   0xb   :  { %3009 = vmatpush3.bf16.msra.mxu0 %v3390_v2  ;;  %3040 = vmatprep.subr.bf16.mxu1 %v3406_v8  ;;  %v2524_v30 = vld [vmem:[%s4375_s2] ss:$0 sm:$0xff] }
   0xc   :  { %3010 = vmatprep.subr.bf16.mxu0 %v3391_v3 }
   0xe   :  { %3041 = vmatpush3.bf16.msra.mxu1 %v3406_v8 }
   0xf   :  { %3011 = vmatpush3.bf16.msra.mxu0 %v3391_v3  ;;  %3042 = vmatprep.subr.bf16.mxu1 %v3407_v10 }
  0x10   :  { %3012 = vmatprep.subr.bf16.mxu0 %v3392_v5 }
  0x12   :  { %3043 = vmatpush3.bf16.msra.mxu1 %v3407_v10 }
  0x13   :  { %3013 = vmatpush3.bf16.msra.mxu0 %v3392_v5  ;;  %3044 = vmatprep.subr.bf16.mxu1 %v3408_v12 }
  0x14   :  { %3014 = vmatprep.subr.bf16.mxu0 %v3393_v9 }
  0x16   :  { %3045 = vmatpush3.bf16.msra.mxu1 %v3408_v12 }
  0x17   :  { %3015 = vmatpush3.bf16.msra.mxu0 %v3393_v9  ;;  %3046 = vmatprep.subr.bf16.mxu1 %v3409_v15 }
  0x18   :  { %3016 = vmatprep.subr.bf16.mxu0 %v3394_v11 }
  0x1a   :  { %3047 = vmatpush3.bf16.msra.mxu1 %v3409_v15 }
  0x1b   :  { %3017 = vmatpush3.bf16.msra.mxu0 %v3394_v11  ;;  %3048 = vmatprep.subr.bf16.mxu1 %v3410_v22 }
  0x1c   :  { %3018 = vmatprep.subr.bf16.mxu0 %v3395_v13 }
  0x1e   :  { %3049 = vmatpush3.bf16.msra.mxu1 %v3410_v22 }
  0x1f   :  { %3019 = vmatpush3.bf16.msra.mxu0 %v3395_v13  ;;  %3050 = vmatprep.subr.bf16.mxu1 %v3411_v23 }
  0x20   :  { %3068 = vmatprep.subr.bf16.mxu0 %v3412_v24 }
  0x22   :  { %3021 = vmatmul.mubr.bf16.vlgmr.msra.gmra.mrb[0].mxu0 %v3588_v14  ;;  %3051 = vmatpush3.bf16.msra.mxu1 %v3411_v23 }
  0x23   :  { %3024 = vmatprep.mubr.bf16.mxu0 %v3596_v16  ;;  %3069 = vmatpush3.bf16.msra.mxu0 %v3412_v24 }
  0x24   :  { %3070 = vmatprep.subr.bf16.mxu0 %v3413_v25 }
  0x27   :  { %3071 = vmatpush3.bf16.msra.mxu0 %v3413_v25 }
  0x28   :  { %3072 = vmatprep.subr.bf16.mxu0 %v3414_v26 }
  0x2a   :  { %3025 = vmatmul.mubr.bf16.gmra.mrb[4].mxu0 %v3601_v17 }
  0x2b   :  { %3028 = vmatprep.mubr.bf16.mxu0 %v3607_v18  ;;  %3073 = vmatpush3.bf16.msra.mxu0 %v3414_v26 }
  0x2c   :  { %3074 = vmatprep.subr.bf16.mxu0 %v3415_v27 }
  0x2f   :  { %3075 = vmatpush3.bf16.msra.mxu0 %v3415_v27 }
  0x30   :  { %3076 = vmatprep.subr.bf16.mxu0 %v3416_v28 }
  0x32   :  { %3029 = vmatmul.mubr.bf16.gmra.mrb[8].mxu0 %v3613_v19 }
  0x33   :  { %3032 = vmatprep.mubr.bf16.mxu0 %v3619_v20  ;;  %3077 = vmatpush3.bf16.msra.mxu0 %v3416_v28 }
  0x34   :  { %3078 = vmatprep.subr.bf16.mxu0 %v3417_v29 }
  0x37   :  { %3079 = vmatpush3.bf16.msra.mxu0 %v3417_v29 }
  0x3a   :  { %3033 = vmatmul.mubr.bf16.gmra.mrb[12].mxu0 %v3625_v21 }
  0xf5   :  { %v3022_v31 = vpop.f32.mrb[0].mxu0 }
  0xf6   :  { %v223_v32 = vadd.f32 %v3022_v31, %v2524_v30  ;;  %v214_v33 = vpop.f32.mrb[1].mxu0 }
  0xf7   :  { %v215_v34 = vadd.f32 %v2524_v30, %v214_v33  ;;  %v3023_v35 = vpop.f32.mrb[2].mxu0  ;;  %v3419_v33 = vld [vmem:[%s4372_s1 + $0x78] sm:$0xff]  }
  0xf8   :  { %v226_v36 = vadd.f32 %v3023_v35, %v2524_v30  ;;  %v217_v37 = vpop.f32.mrb[3].mxu0  ;;  %v279_v39 = vmax.f32 %v223_v32, 0.0  ;;  %v3418_v32 = vld [vmem:[%s4372_s1 + $0x70] sm:$0xff]  }
  0xf9   :  { %v218_v38 = vadd.f32 %v2524_v30, %v217_v37  ;;  %v277_v41 = vmax.f32 %v215_v34, 0.0  ;;  %3080 = vmatprep.subr.bf16.mxu0 %v3418_v32  ;;  %v3421_v34 = vld [vmem:[%s4374_s3 + $0x48] sm:$0xff]   ;;  %v3422_v35 = vld [vmem:[%s4374_s3 + $0x50] sm:$0xff]   ;;  %v3424_v37 = vld [vmem:[%s4374_s3 + $0x60] sm:$0xff]  }
  0xfa   :  { %v280_v40 = vmax.f32 %v226_v36, 0.0  ;;  %3081 = vmatpush3.bf16.msra.mxu0 %v3418_v32  ;;  %v3423_v36 = vld [vmem:[%s4374_s3 + $0x58] sm:$0xff]  }
  0xfb   :  { %v278_v42 = vmax.f32 %v218_v38, 0.0  ;;  %3082 = vmatprep.subr.bf16.mxu0 %v3419_v33  ;;  %v3425_v38 = vld [vmem:[%s4374_s3 + $0x68] sm:$0xff]  }
  0xfc   :  { %v294_v43 = vpack.c.bf16 %v280_v40, %v279_v39  ;;  %v3684_v39 = vld [vmem:[%s4376_s4] ss:$0 sm:$0xff]  ;;  %v45_v40 = vunpack.c.l.bf16 %v3555_v4 }
  0xfd   :  { %v3026_v44 = vpop.f32.mrb[4].mxu0  ;;  %v293_v45 = vpack.c.bf16 %v278_v42, %v277_v41 }
  0xfe   :  { %v239_v46 = vadd.f32 %v3026_v44, %v2524_v30  ;;  %v230_v47 = vpop.f32.mrb[5].mxu0  ;;  %3083 = vmatpush3.bf16.msra.mxu0 %v3419_v33  ;;  %v46_v44 = vunpack.c.h.bf16 %v3555_v4 }
  0xff   :  { %v231_v48 = vadd.f32 %v2524_v30, %v230_v47  ;;  %v3027_v49 = vpop.f32.mrb[6].mxu0  ;;  %3052 = vmatprep.mubr.bf16.mxu1 %v293_v45  ;;  %v47_v47 = vunpack.c.l.bf16 %v3588_v14 }
 0x100   :  { %v242_v50 = vadd.f32 %v3027_v49, %v2524_v30  ;;  %v233_v51 = vpop.f32.mrb[7].mxu0  ;;  %3053 = vmatmul.mubr.bf16.vlgmr.msra.gmra.mrb[0].mxu1 %v294_v43  ;;  %v283_v53 = vmax.f32 %v239_v46, 0.0  ;;  %v48_v43 = vunpack.c.h.bf16 %v3588_v14 }
 0x101   :  { %v234_v52 = vadd.f32 %v2524_v30, %v233_v51  ;;  %v281_v55 = vmax.f32 %v231_v48, 0.0 }
 0x102   :  { %v284_v54 = vmax.f32 %v242_v50, 0.0 }
 0x103   :  { %v282_v56 = vmax.f32 %v234_v52, 0.0 }
 0x104   :  { %v296_v57 = vpack.c.bf16 %v284_v54, %v283_v53 }
 0x105   :  { %v295_v58 = vpack.c.bf16 %v282_v56, %v281_v55  ;;  %v3030_v59 = vpop.f32.mrb[8].mxu0 }
 0x106   :  { %v255_v60 = vadd.f32 %v3030_v59, %v2524_v30  ;;  %v246_v61 = vpop.f32.mrb[9].mxu0  ;;  %v49_v59 = vunpack.c.l.bf16 %v3596_v16 }
 0x107   :  { %v247_v62 = vadd.f32 %v2524_v30, %v246_v61  ;;  %v3031_v63 = vpop.f32.mrb[10].mxu0  ;;  %3056 = vmatprep.mubr.bf16.mxu1 %v295_v58  ;;  %v52_v58 = vunpack.c.h.bf16 %v3601_v17 }
 0x108   :  { %v258_v0 = vadd.f32 %v3031_v63, %v2524_v30  ;;  %v249_v1 = vpop.f32.mrb[11].mxu0  ;;  %3057 = vmatmul.mubr.bf16.gmra.mrb[4].mxu1 %v296_v57  ;;  %v287_v3 = vmax.f32 %v255_v60, 0.0  ;;  %v51_v63 = vunpack.c.l.bf16 %v3601_v17 }
 0x109   :  { %v250_v2 = vadd.f32 %v2524_v30, %v249_v1  ;;  %v285_v6 = vmax.f32 %v247_v62, 0.0  ;;  %v50_v62 = vunpack.c.h.bf16 %v3596_v16 }
 0x10a   :  { %v288_v5 = vmax.f32 %v258_v0, 0.0 }
 0x10b   :  { %v286_v7 = vmax.f32 %v250_v2, 0.0 }
 0x10c   :  { %v298_v8 = vpack.c.bf16 %v288_v5, %v287_v3 }
 0x10d   :  { %v297_v9 = vpack.c.bf16 %v286_v7, %v285_v6  ;;  %v3034_v10 = vpop.f32.mrb[12].mxu0 }
 0x10e   :  { %v271_v11 = vadd.f32 %v3034_v10, %v2524_v30  ;;  %v262_v12 = vpop.f32.mrb[13].mxu0  ;;  %v56_v10 = vunpack.c.h.bf16 %v3613_v19 }
 0x10f   :  { %v263_v13 = vadd.f32 %v2524_v30, %v262_v12  ;;  %v3035_v15 = vpop.f32.mrb[14].mxu0  ;;  %3060 = vmatprep.mubr.bf16.mxu1 %v297_v9  ;;  %v53_v12 = vunpack.c.l.bf16 %v3607_v18 }
 0x110   :  { %v274_v22 = vadd.f32 %v3035_v15, %v2524_v30  ;;  %v265_v23 = vpop.f32.mrb[15].mxu0  ;;  %3061 = vmatmul.mubr.bf16.gmra.mrb[8].mxu1 %v298_v8  ;;  %v291_v25 = vmax.f32 %v271_v11, 0.0 }
 0x111   :  { %v266_v24 = vadd.f32 %v2524_v30, %v265_v23  ;;  %v289_v27 = vmax.f32 %v263_v13, 0.0  ;;  %v3420_v30 = vld [vmem:[%s4374_s3 + $0x40] sm:$0xff]   ;;  %v55_v23 = vunpack.c.l.bf16 %v3613_v19 }
 0x112   :  { %v292_v26 = vmax.f32 %v274_v22, 0.0  ;;  %3100 = vmatprep.subr.bf16.mxu1 %v3420_v30  ;;  %v54_v22 = vunpack.c.h.bf16 %v3607_v18 }
 0x113   :  { %v290_v28 = vmax.f32 %v266_v24, 0.0  ;;  %3101 = vmatpush3.bf16.msra.mxu1 %v3420_v30  ;;  %v60_v30 = vunpack.c.h.bf16 %v3625_v21 }
 0x114   :  { %v300_v29 = vpack.c.bf16 %v292_v26, %v291_v25  ;;  %3102 = vmatprep.subr.bf16.mxu1 %v3421_v34 }
 0x115   :  { %v299_v31 = vpack.c.bf16 %v290_v28, %v289_v27 }
 0x117   :  { %3064 = vmatprep.mubr.bf16.mxu1 %v299_v31  ;;  %3103 = vmatpush3.bf16.msra.mxu1 %v3421_v34 }
 0x118   :  { %3065 = vmatmul.mubr.bf16.gmra.mrb[12].mxu1 %v300_v29  ;;  %3104 = vmatprep.subr.bf16.mxu1 %v3422_v35 }
 0x11b   :  { %3105 = vmatpush3.bf16.msra.mxu1 %v3422_v35  ;;  %v57_v35 = vunpack.c.l.bf16 %v3619_v20 }
 0x11c   :  { %3106 = vmatprep.subr.bf16.mxu1 %v3423_v36 }
 0x11f   :  { %3107 = vmatpush3.bf16.msra.mxu1 %v3423_v36 }
 0x120   :  { %3108 = vmatprep.subr.bf16.mxu1 %v3424_v37 }
 0x123   :  { %3109 = vmatpush3.bf16.msra.mxu1 %v3424_v37 }
 0x124   :  { %3110 = vmatprep.subr.bf16.mxu1 %v3425_v38 }
 0x127   :  { %3111 = vmatpush3.bf16.msra.mxu1 %v3425_v38  ;;  %v58_v38 = vunpack.c.h.bf16 %v3619_v20 }
 0x1d3   :  { %v3054_v41 = vpop.f32.mrb[0].mxu1 }
 0x1d4   :  { %v406_v42 = vpop.f32.mrb[1].mxu1  ;;  %v415_v48 = vadd.f32 %v3054_v41, %v3684_v39 }
 0x1d5   :  { %v407_v45 = vadd.f32 %v3684_v39, %v406_v42  ;;  %v3055_v46 = vpop.f32.mrb[2].mxu1 }
 0x1d6   :  { %v418_v49 = vadd.f32 %v3055_v46, %v3684_v39  ;;  %v409_v50 = vpop.f32.mrb[3].mxu1  ;;  %v3700_v55 = vadd.f32 %v415_v48, %v47_v47 }
 0x1d7   :  { %v3693_v51 = vadd.f32 %v407_v45, %v45_v40  ;;  %v410_v52 = vadd.f32 %v3684_v39, %v409_v50  ;;  %v59_v40 = vunpack.c.l.bf16 %v3625_v21  ;;  %v3428_v50 = vld [vmem:[%s4372_s1 + $0x80] sm:$0xff]  }
 0x1d8   :  { %v3696_v53 = vadd.f32 %v418_v49, %v48_v43  ;;  %v3427_v49 = vld [vmem:[%s4374_s3 + $0x78] sm:$0xff]   ;;  %3132 = vmatprep.subr.bf16.mxu0 %v3428_v50 }
 0x1d9   :  { %v3698_v54 = vadd.f32 %v410_v52, %v46_v44  ;;  %v3429_v52 = vld [vmem:[%s4372_s1 + $0x88] sm:$0xff]  }
 0x1da   :  { %v486_v14 = vpack.c.bf16 %v3696_v53, %v3700_v55 }
 0x1db   :  { %v3058_v4 = vpop.f32.mrb[4].mxu1  ;;  %v485_v56 = vpack.c.bf16 %v3698_v54, %v3693_v51 }
 0x1dc   :  { %v422_v57 = vpop.f32.mrb[5].mxu1  ;;  %v431_v0 = vadd.f32 %v3058_v4, %v3684_v39  ;;  %v3430_v4 = vld [vmem:[%s4372_s1 + $0x90] sm:$0xff]  }
 0x1dd   :  { %v423_v60 = vadd.f32 %v3684_v39, %v422_v57  ;;  %v3059_v61 = vpop.f32.mrb[6].mxu1  ;;  %3084 = vmatprep.mubr.bf16.mxu0 %v485_v56  ;;  %v3431_v56 = vld [vmem:[%s4372_s1 + $0x98] sm:$0xff]   ;;  %v3433_v57 = vld [vmem:[%s4372_s1 + $0xa8] sm:$0xff]  }
 0x1de   :  { %v434_v1 = vadd.f32 %v3059_v61, %v3684_v39  ;;  %v425_v2 = vpop.f32.mrb[7].mxu1  ;;  %3085 = vmatmul.mubr.bf16.vlgmr.msra.gmra.mrb[16].mxu0 %v486_v14  ;;  %v3720_v8 = vadd.f32 %v431_v0, %v51_v63  ;;  %v3432_v14 = vld [vmem:[%s4372_s1 + $0xa0] sm:$0xff]  }
 0x1df   :  { %v426_v3 = vadd.f32 %v3684_v39, %v425_v2  ;;  %v3716_v6 = vadd.f32 %v423_v60, %v49_v59  ;;  %3133 = vmatpush3.bf16.msra.mxu0 %v3428_v50 }
 0x1e0   :  { %v3714_v5 = vadd.f32 %v434_v1, %v52_v58  ;;  %3134 = vmatprep.subr.bf16.mxu0 %v3429_v52  ;;  %v2567_v58 = vld [vmem:[%s4375_s2 + $0x1] ss:$0 sm:$0xff] }
 0x1e1   :  { %v3718_v7 = vadd.f32 %v426_v3, %v50_v62 }
 0x1e2   :  { %v488_v11 = vpack.c.bf16 %v3714_v5, %v3720_v8 }
 0x1e3   :  { %v3062_v9 = vpop.f32.mrb[8].mxu1  ;;  %v487_v16 = vpack.c.bf16 %v3718_v7, %v3716_v6  ;;  %3135 = vmatpush3.bf16.msra.mxu0 %v3429_v52 }
 0x1e4   :  { %v438_v17 = vpop.f32.mrb[9].mxu1  ;;  %v447_v24 = vadd.f32 %v3062_v9, %v3684_v39  ;;  %3136 = vmatprep.subr.bf16.mxu0 %v3430_v4 }
 0x1e5   :  { %v439_v13 = vadd.f32 %v3684_v39, %v438_v17  ;;  %v3063_v15 = vpop.f32.mrb[10].mxu1  ;;  %3088 = vmatprep.mubr.bf16.mxu0 %v487_v16 }
 0x1e6   :  { %v450_v25 = vadd.f32 %v3063_v15, %v3684_v39  ;;  %v441_v26 = vpop.f32.mrb[11].mxu1  ;;  %3089 = vmatmul.mubr.bf16.gmra.mrb[20].mxu0 %v488_v11  ;;  %v3740_v32 = vadd.f32 %v447_v24, %v55_v23 }
 0x1e7   :  { %v442_v27 = vadd.f32 %v3684_v39, %v441_v26  ;;  %v3736_v29 = vadd.f32 %v439_v13, %v53_v12  ;;  %3137 = vmatpush3.bf16.msra.mxu0 %v3430_v4 }
 0x1e8   :  { %v3734_v28 = vadd.f32 %v450_v25, %v56_v10  ;;  %3138 = vmatprep.subr.bf16.mxu0 %v3431_v56 }
 0x1e9   :  { %v3738_v31 = vadd.f32 %v442_v27, %v54_v22 }
 0x1ea   :  { %v490_v34 = vpack.c.bf16 %v3734_v28, %v3740_v32 }
 0x1eb   :  { %v3066_v33 = vpop.f32.mrb[12].mxu1  ;;  %v489_v18 = vpack.c.bf16 %v3738_v31, %v3736_v29  ;;  %3139 = vmatpush3.bf16.msra.mxu0 %v3431_v56 }
 0x1ec   :  { %v454_v19 = vpop.f32.mrb[13].mxu1  ;;  %v463_v41 = vadd.f32 %v3066_v33, %v3684_v39  ;;  %3140 = vmatprep.subr.bf16.mxu0 %v3432_v14 }
 0x1ed   :  { %v455_v36 = vadd.f32 %v3684_v39, %v454_v19  ;;  %v3067_v37 = vpop.f32.mrb[14].mxu1  ;;  %3092 = vmatprep.mubr.bf16.mxu0 %v489_v18 }
 0x1ee   :  { %v466_v42 = vadd.f32 %v3067_v37, %v3684_v39  ;;  %v457_v43 = vpop.f32.mrb[15].mxu1  ;;  %3093 = vmatmul.mubr.bf16.gmra.mrb[24].mxu0 %v490_v34  ;;  %v3760_v48 = vadd.f32 %v463_v41, %v59_v40 }
 0x1ef   :  { %v458_v44 = vadd.f32 %v3684_v39, %v457_v43  ;;  %v3756_v46 = vadd.f32 %v455_v36, %v57_v35  ;;  %v3426_v39 = vld [vmem:[%s4374_s3 + $0x70] sm:$0xff]   ;;  %3141 = vmatpush3.bf16.msra.mxu0 %v3432_v14 }
 0x1f0   :  { %v3754_v45 = vadd.f32 %v466_v42, %v60_v30  ;;  %3112 = vmatprep.subr.bf16.mxu1 %v3426_v39  ;;  %3142 = vmatprep.subr.bf16.mxu0 %v3433_v57 }
 0x1f1   :  { %v3758_v47 = vadd.f32 %v458_v44, %v58_v38  ;;  %3113 = vmatpush3.bf16.msra.mxu1 %v3426_v39 }
 0x1f2   :  { %v492_v21 = vpack.c.bf16 %v3754_v45, %v3760_v48  ;;  %3114 = vmatprep.subr.bf16.mxu1 %v3427_v49 }
 0x1f3   :  { %v491_v20 = vpack.c.bf16 %v3758_v47, %v3756_v46  ;;  %3143 = vmatpush3.bf16.msra.mxu0 %v3433_v57 }
 0x1f5   :  { %3096 = vmatprep.mubr.bf16.mxu0 %v491_v20  ;;  %3115 = vmatpush3.bf16.msra.mxu1 %v3427_v49 }
 0x1f6   :  { %3097 = vmatmul.mubr.bf16.gmra.mrb[28].mxu0 %v492_v21 }
 0x2b1   :  { %v3086_v59 = vpop.f32.mrb[16].mxu0 }
 0x2b2   :  { %v609_v60 = vadd.f32 %v3086_v59, %v2567_v58  ;;  %v600_v61 = vpop.f32.mrb[17].mxu0 }
 0x2b3   :  { %v601_v62 = vadd.f32 %v2567_v58, %v600_v61  ;;  %v3087_v63 = vpop.f32.mrb[18].mxu0 }
 0x2b4   :  { %v612_v0 = vadd.f32 %v3087_v63, %v2567_v58  ;;  %v603_v1 = vpop.f32.mrb[19].mxu0  ;;  %v665_v3 = vmax.f32 %v609_v60, 0.0 }
 0x2b5   :  { %v604_v2 = vadd.f32 %v2567_v58, %v603_v1  ;;  %v663_v16 = vmax.f32 %v601_v62, 0.0 }
 0x2b6   :  { %v666_v9 = vmax.f32 %v612_v0, 0.0 }
 0x2b7   :  { %v664_v17 = vmax.f32 %v604_v2, 0.0 }
 0x2b8   :  { %v680_v10 = vpack.c.bf16 %v666_v9, %v665_v3  ;;  %v3434_v9 = vld [vmem:[%s4372_s1 + $0xb0] sm:$0xff]  }
 0x2b9   :  { %v679_v11 = vpack.c.bf16 %v664_v17, %v663_v16  ;;  %v3090_v12 = vpop.f32.mrb[20].mxu0  ;;  %3144 = vmatprep.subr.bf16.mxu0 %v3434_v9  ;;  %v3435_v16 = vld [vmem:[%s4372_s1 + $0xb8] sm:$0xff]   ;;  %v3437_v17 = vld [vmem:[%s4374_s3 + $0x88] sm:$0xff]  }
 0x2ba   :  { %v625_v13 = vadd.f32 %v3090_v12, %v2567_v58  ;;  %v616_v15 = vpop.f32.mrb[21].mxu0  ;;  %3145 = vmatpush3.bf16.msra.mxu0 %v3434_v9  ;;  %v3440_v12 = vld [vmem:[%s4374_s3 + $0xa0] sm:$0xff]  }
 0x2bb   :  { %v617_v22 = vadd.f32 %v2567_v58, %v616_v15  ;;  %v3091_v23 = vpop.f32.mrb[22].mxu0  ;;  %3116 = vmatprep.mubr.bf16.mxu1 %v679_v11  ;;  %3146 = vmatprep.subr.bf16.mxu0 %v3435_v16  ;;  %v3439_v11 = vld [vmem:[%s4374_s3 + $0x98] sm:$0xff]   ;;  %v2593_v15 = vld [vmem:[%s4376_s4 + $0x1] ss:$0 sm:$0xff] }
 0x2bc   :  { %v628_v24 = vadd.f32 %v3091_v23, %v2567_v58  ;;  %v619_v25 = vpop.f32.mrb[23].mxu0  ;;  %3117 = vmatmul.mubr.bf16.vlgmr.msra.gmra.mrb[16].mxu1 %v680_v10  ;;  %v669_v27 = vmax.f32 %v625_v13, 0.0  ;;  %v3438_v10 = vld [vmem:[%s4374_s3 + $0x90] sm:$0xff]   ;;  %v3441_v13 = vld [vmem:[%s4374_s3 + $0xa8] sm:$0xff]  }
 0x2bd   :  { %v620_v26 = vadd.f32 %v2567_v58, %v619_v25  ;;  %v667_v18 = vmax.f32 %v617_v22, 0.0 }
 0x2be   :  { %v670_v33 = vmax.f32 %v628_v24, 0.0  ;;  %3147 = vmatpush3.bf16.msra.mxu0 %v3435_v16 }
 0x2bf   :  { %v668_v19 = vmax.f32 %v620_v26, 0.0 }
 0x2c0   :  { %v682_v30 = vpack.c.bf16 %v670_v33, %v669_v27 }
 0x2c1   :  { %v681_v34 = vpack.c.bf16 %v668_v19, %v667_v18  ;;  %v3094_v35 = vpop.f32.mrb[24].mxu0 }
 0x2c2   :  { %v641_v36 = vadd.f32 %v3094_v35, %v2567_v58  ;;  %v632_v37 = vpop.f32.mrb[25].mxu0 }
 0x2c3   :  { %v633_v38 = vadd.f32 %v2567_v58, %v632_v37  ;;  %v3095_v40 = vpop.f32.mrb[26].mxu0  ;;  %3120 = vmatprep.mubr.bf16.mxu1 %v681_v34 }
 0x2c4   :  { %v644_v41 = vadd.f32 %v3095_v40, %v2567_v58  ;;  %v635_v42 = vpop.f32.mrb[27].mxu0  ;;  %3121 = vmatmul.mubr.bf16.gmra.mrb[20].mxu1 %v682_v30  ;;  %v673_v44 = vmax.f32 %v641_v36, 0.0 }
 0x2c5   :  { %v636_v43 = vadd.f32 %v2567_v58, %v635_v42  ;;  %v671_v21 = vmax.f32 %v633_v38, 0.0 }
 0x2c6   :  { %v674_v20 = vmax.f32 %v644_v41, 0.0 }
 0x2c7   :  { %v672_v39 = vmax.f32 %v636_v43, 0.0 }
 0x2c8   :  { %v684_v49 = vpack.c.bf16 %v674_v20, %v673_v44 }
 0x2c9   :  { %v683_v50 = vpack.c.bf16 %v672_v39, %v671_v21  ;;  %v3098_v52 = vpop.f32.mrb[28].mxu0 }
 0x2ca   :  { %v657_v4 = vadd.f32 %v3098_v52, %v2567_v58  ;;  %v648_v56 = vpop.f32.mrb[29].mxu0 }
 0x2cb   :  { %v649_v14 = vadd.f32 %v2567_v58, %v648_v56  ;;  %v3099_v57 = vpop.f32.mrb[30].mxu0  ;;  %3124 = vmatprep.mubr.bf16.mxu1 %v683_v50 }
 0x2cc   :  { %v660_v59 = vadd.f32 %v3099_v57, %v2567_v58  ;;  %v651_v60 = vpop.f32.mrb[31].mxu0  ;;  %3125 = vmatmul.mubr.bf16.gmra.mrb[24].mxu1 %v684_v49  ;;  %v677_v62 = vmax.f32 %v657_v4, 0.0 }
 0x2cd   :  { %v652_v61 = vadd.f32 %v2567_v58, %v651_v60  ;;  %v675_v0 = vmax.f32 %v649_v14, 0.0  ;;  %v3436_v58 = vld [vmem:[%s4374_s3 + $0x80] sm:$0xff]  }
 0x2ce   :  { %v678_v63 = vmax.f32 %v660_v59, 0.0  ;;  %3164 = vmatprep.subr.bf16.mxu1 %v3436_v58 }
 0x2cf   :  { %v676_v1 = vmax.f32 %v652_v61, 0.0  ;;  %3165 = vmatpush3.bf16.msra.mxu1 %v3436_v58 }
 0x2d0   :  { %v686_v2 = vpack.c.bf16 %v678_v63, %v677_v62  ;;  %3166 = vmatprep.subr.bf16.mxu1 %v3437_v17 }
 0x2d1   :  { %v685_v3 = vpack.c.bf16 %v676_v1, %v675_v0 }
 0x2d3   :  { %3128 = vmatprep.mubr.bf16.mxu1 %v685_v3  ;;  %3167 = vmatpush3.bf16.msra.mxu1 %v3437_v17 }
 0x2d4   :  { %3129 = vmatmul.mubr.bf16.gmra.mrb[28].mxu1 %v686_v2  ;;  %3168 = vmatprep.subr.bf16.mxu1 %v3438_v10 }
 0x2d7   :  { %3169 = vmatpush3.bf16.msra.mxu1 %v3438_v10 }
 0x2d8   :  { %3170 = vmatprep.subr.bf16.mxu1 %v3439_v11 }
 0x2db   :  { %3171 = vmatpush3.bf16.msra.mxu1 %v3439_v11  ;;  %v3446_v11 = vld [vmem:[%s4372_s1 + $0xd0] sm:$0xff]  }
 0x2dc   :  { %3172 = vmatprep.subr.bf16.mxu1 %v3440_v12 }
 0x2df   :  { %3173 = vmatpush3.bf16.msra.mxu1 %v3440_v12  ;;  %v3447_v12 = vld [vmem:[%s4372_s1 + $0xd8] sm:$0xff]  }
 0x2e0   :  { %3174 = vmatprep.subr.bf16.mxu1 %v3441_v13 }
 0x2e3   :  { %3175 = vmatpush3.bf16.msra.mxu1 %v3441_v13  ;;  %v3448_v13 = vld [vmem:[%s4372_s1 + $0xe0] sm:$0xff]  }
 0x38f   :  { %v3118_v22 = vpop.f32.mrb[16].mxu1 }
 0x390   :  { %v794_v23 = vpop.f32.mrb[17].mxu1  ;;  %v803_v26 = vadd.f32 %v3118_v22, %v2593_v15  ;;  %v2619_v22 = vld [vmem:[%s4375_s2 + $0x2] ss:$0 sm:$0xff] }
 0x391   :  { %v795_v24 = vadd.f32 %v2593_v15, %v794_v23  ;;  %v3119_v25 = vpop.f32.mrb[18].mxu1 }
 0x392   :  { %v806_v27 = vadd.f32 %v3119_v25, %v2593_v15  ;;  %v797_v33 = vpop.f32.mrb[19].mxu1  ;;  %v3830_v35 = vadd.f32 %v803_v26, %v3700_v55 }
 0x393   :  { %v798_v18 = vadd.f32 %v2593_v15, %v797_v33  ;;  %v3824_v30 = vadd.f32 %v795_v24, %v3693_v51 }
 0x394   :  { %v3821_v19 = vadd.f32 %v806_v27, %v3696_v53 }
 0x395   :  { %v3827_v34 = vadd.f32 %v798_v18, %v3698_v54 }
 0x396   :  { %v874_v38 = vpack.c.bf16 %v3821_v19, %v3830_v35 }
 0x397   :  { %v3122_v36 = vpop.f32.mrb[20].mxu1  ;;  %v873_v37 = vpack.c.bf16 %v3827_v34, %v3824_v30 }
 0x398   :  { %v810_v40 = vpop.f32.mrb[21].mxu1  ;;  %v819_v42 = vadd.f32 %v3122_v36, %v2593_v15 }
 0x399   :  { %v811_v41 = vadd.f32 %v2593_v15, %v810_v40  ;;  %v3123_v53 = vpop.f32.mrb[22].mxu1  ;;  %3148 = vmatprep.mubr.bf16.mxu0 %v873_v37 }
 0x39a   :  { %v822_v51 = vadd.f32 %v3123_v53, %v2593_v15  ;;  %v813_v43 = vpop.f32.mrb[23].mxu1  ;;  %3149 = vmatmul.mubr.bf16.vlgmr.msra.gmra.mrb[32].mxu0 %v874_v38  ;;  %v3846_v21 = vadd.f32 %v819_v42, %v3720_v8 }
 0x39b   :  { %v814_v54 = vadd.f32 %v2593_v15, %v813_v43  ;;  %v3840_v55 = vadd.f32 %v811_v41, %v3716_v6 }
 0x39c   :  { %v3837_v44 = vadd.f32 %v822_v51, %v3714_v5 }
 0x39d   :  { %v3843_v20 = vadd.f32 %v814_v54, %v3718_v7 }
 0x39e   :  { %v876_v52 = vpack.c.bf16 %v3837_v44, %v3846_v21 }
 0x39f   :  { %v3126_v39 = vpop.f32.mrb[24].mxu1  ;;  %v875_v49 = vpack.c.bf16 %v3843_v20, %v3840_v55 }
 0x3a0   :  { %v826_v50 = vpop.f32.mrb[25].mxu1  ;;  %v835_v56 = vadd.f32 %v3126_v39, %v2593_v15 }
 0x3a1   :  { %v827_v4 = vadd.f32 %v2593_v15, %v826_v50  ;;  %v3127_v5 = vpop.f32.mrb[26].mxu1  ;;  %3152 = vmatprep.mubr.bf16.mxu0 %v875_v49 }
 0x3a2   :  { %v838_v6 = vadd.f32 %v3127_v5, %v2593_v15  ;;  %v829_v14 = vpop.f32.mrb[27].mxu1  ;;  %3153 = vmatmul.mubr.bf16.gmra.mrb[36].mxu0 %v876_v52  ;;  %v3862_v60 = vadd.f32 %v835_v56, %v3740_v32 }
 0x3a3   :  { %v830_v7 = vadd.f32 %v2593_v15, %v829_v14  ;;  %v3856_v8 = vadd.f32 %v827_v4, %v3736_v29 }
 0x3a4   :  { %v3853_v57 = vadd.f32 %v838_v6, %v3734_v28 }
 0x3a5   :  { %v3859_v59 = vadd.f32 %v830_v7, %v3738_v31 }
 0x3a6   :  { %v878_v0 = vpack.c.bf16 %v3853_v57, %v3862_v60 }
 0x3a7   :  { %v3130_v61 = vpop.f32.mrb[28].mxu1  ;;  %v877_v62 = vpack.c.bf16 %v3859_v59, %v3856_v8 }
 0x3a8   :  { %v842_v63 = vpop.f32.mrb[29].mxu1  ;;  %v851_v2 = vadd.f32 %v3130_v61, %v2593_v15 }
 0x3a9   :  { %v843_v1 = vadd.f32 %v2593_v15, %v842_v63  ;;  %v3131_v28 = vpop.f32.mrb[30].mxu1  ;;  %3156 = vmatprep.mubr.bf16.mxu0 %v877_v62 }
 0x3aa   :  { %v854_v29 = vadd.f32 %v3131_v28, %v2593_v15  ;;  %v845_v3 = vpop.f32.mrb[31].mxu1  ;;  %3157 = vmatmul.mubr.bf16.gmra.mrb[40].mxu0 %v878_v0  ;;  %v3878_v58 = vadd.f32 %v851_v2, %v3760_v48  ;;  %v3445_v48 = vld [vmem:[%s4372_s1 + $0xc8] sm:$0xff]  }
 0x3ab   :  { %v846_v31 = vadd.f32 %v2593_v15, %v845_v3  ;;  %v3872_v32 = vadd.f32 %v843_v1, %v3756_v46  ;;  %v3443_v46 = vld [vmem:[%s4374_s3 + $0xb8] sm:$0xff]   ;;  %v3449_v15 = vld [vmem:[%s4372_s1 + $0xe8] sm:$0xff]  }
 0x3ac   :  { %v3869_v9 = vadd.f32 %v854_v29, %v3754_v45  ;;  %v3442_v45 = vld [vmem:[%s4374_s3 + $0xb0] sm:$0xff]  }
 0x3ad   :  { %v3875_v16 = vadd.f32 %v846_v31, %v3758_v47  ;;  %3176 = vmatprep.subr.bf16.mxu1 %v3442_v45  ;;  %v3444_v47 = vld [vmem:[%s4372_s1 + $0xc0] sm:$0xff]  }
 0x3ae   :  { %v880_v10 = vpack.c.bf16 %v3869_v9, %v3878_v58  ;;  %3177 = vmatpush3.bf16.msra.mxu1 %v3442_v45  ;;  %3196 = vmatprep.subr.bf16.mxu0 %v3444_v47 }
 0x3af   :  { %v879_v17 = vpack.c.bf16 %v3875_v16, %v3872_v32  ;;  %3178 = vmatprep.subr.bf16.mxu1 %v3443_v46  ;;  %3197 = vmatpush3.bf16.msra.mxu0 %v3444_v47 }
 0x3b0   :  { %3198 = vmatprep.subr.bf16.mxu0 %v3445_v48 }
 0x3b1   :  { %3160 = vmatprep.mubr.bf16.mxu0 %v879_v17 }
 0x3b2   :  { %3161 = vmatmul.mubr.bf16.gmra.mrb[44].mxu0 %v880_v10  ;;  %3179 = vmatpush3.bf16.msra.mxu1 %v3443_v46 }
 0x3b3   :  { %3199 = vmatpush3.bf16.msra.mxu0 %v3445_v48 }
 0x3b4   :  { %3200 = vmatprep.subr.bf16.mxu0 %v3446_v11 }
 0x3b7   :  { %3201 = vmatpush3.bf16.msra.mxu0 %v3446_v11 }
 0x3b8   :  { %3202 = vmatprep.subr.bf16.mxu0 %v3447_v12 }
 0x3bb   :  { %3203 = vmatpush3.bf16.msra.mxu0 %v3447_v12 }
 0x3bc   :  { %3204 = vmatprep.subr.bf16.mxu0 %v3448_v13 }
 0x3bf   :  { %3205 = vmatpush3.bf16.msra.mxu0 %v3448_v13 }
 0x3c0   :  { %3206 = vmatprep.subr.bf16.mxu0 %v3449_v15 }
 0x3c3   :  { %3207 = vmatpush3.bf16.msra.mxu0 %v3449_v15 }
 0x46d   :  { %v3150_v23 = vpop.f32.mrb[32].mxu0 }
 0x46e   :  { %v997_v24 = vadd.f32 %v3150_v23, %v2619_v22  ;;  %v988_v25 = vpop.f32.mrb[33].mxu0 }
 0x46f   :  { %v989_v26 = vadd.f32 %v2619_v22, %v988_v25  ;;  %v3151_v27 = vpop.f32.mrb[34].mxu0 }
 0x470   :  { %v1000_v33 = vadd.f32 %v3151_v27, %v2619_v22  ;;  %v991_v18 = vpop.f32.mrb[35].mxu0  ;;  %v1053_v37 = vmax.f32 %v997_v24, 0.0 }
 0x471   :  { %v992_v36 = vadd.f32 %v2619_v22, %v991_v18  ;;  %v1051_v40 = vmax.f32 %v989_v26, 0.0 }
 0x472   :  { %v1054_v38 = vmax.f32 %v1000_v33, 0.0 }
 0x473   :  { %v1052_v41 = vmax.f32 %v992_v36, 0.0 }
 0x474   :  { %v1068_v53 = vpack.c.bf16 %v1054_v38, %v1053_v37  ;;  %v3450_v38 = vld [vmem:[%s4372_s1 + $0xf0] sm:$0xff]  }
 0x475   :  { %v1067_v42 = vpack.c.bf16 %v1052_v41, %v1051_v40  ;;  %v3154_v51 = vpop.f32.mrb[36].mxu0  ;;  %3208 = vmatprep.subr.bf16.mxu0 %v3450_v38  ;;  %v3451_v40 = vld [vmem:[%s4372_s1 + $0xf8] sm:$0xff]   ;;  %v3453_v41 = vld [vmem:[%s4374_s3 + $0xc8] sm:$0xff]  }
 0x476   :  { %v1013_v43 = vadd.f32 %v3154_v51, %v2619_v22  ;;  %v1004_v54 = vpop.f32.mrb[37].mxu0  ;;  %3209 = vmatpush3.bf16.msra.mxu0 %v3450_v38  ;;  %v3456_v51 = vld [vmem:[%s4374_s3 + $0xe0] sm:$0xff]  }
 0x477   :  { %v1005_v39 = vadd.f32 %v2619_v22, %v1004_v54  ;;  %v3155_v49 = vpop.f32.mrb[38].mxu0  ;;  %3180 = vmatprep.mubr.bf16.mxu1 %v1067_v42  ;;  %3210 = vmatprep.subr.bf16.mxu0 %v3451_v40  ;;  %v3455_v42 = vld [vmem:[%s4374_s3 + $0xd8] sm:$0xff]   ;;  %v2645_v54 = vld [vmem:[%s4376_s4 + $0x2] ss:$0 sm:$0xff] }
 0x478   :  { %v1016_v50 = vadd.f32 %v3155_v49, %v2619_v22  ;;  %v1007_v52 = vpop.f32.mrb[39].mxu0  ;;  %3181 = vmatmul.mubr.bf16.vlgmr.msra.gmra.mrb[32].mxu1 %v1068_v53  ;;  %v1057_v5 = vmax.f32 %v1013_v43, 0.0  ;;  %v3454_v53 = vld [vmem:[%s4374_s3 + $0xd0] sm:$0xff]   ;;  %v3457_v43 = vld [vmem:[%s4374_s3 + $0xe8] sm:$0xff]  }
 0x479   :  { %v1008_v4 = vadd.f32 %v2619_v22, %v1007_v52  ;;  %v1055_v6 = vmax.f32 %v1005_v39, 0.0 }
 0x47a   :  { %v1058_v56 = vmax.f32 %v1016_v50, 0.0  ;;  %3211 = vmatpush3.bf16.msra.mxu0 %v3451_v40 }
 0x47b   :  { %v1056_v14 = vmax.f32 %v1008_v4, 0.0 }
 0x47c   :  { %v1070_v7 = vpack.c.bf16 %v1058_v56, %v1057_v5 }
 0x47d   :  { %v1069_v61 = vpack.c.bf16 %v1056_v14, %v1055_v6  ;;  %v3158_v62 = vpop.f32.mrb[40].mxu0 }
 0x47e   :  { %v1029_v63 = vadd.f32 %v3158_v62, %v2619_v22  ;;  %v1020_v0 = vpop.f32.mrb[41].mxu0 }
 0x47f   :  { %v1021_v1 = vadd.f32 %v2619_v22, %v1020_v0  ;;  %v3159_v28 = vpop.f32.mrb[42].mxu0  ;;  %3184 = vmatprep.mubr.bf16.mxu1 %v1069_v61 }
 0x480   :  { %v1032_v2 = vadd.f32 %v3159_v28, %v2619_v22  ;;  %v1023_v29 = vpop.f32.mrb[43].mxu0  ;;  %3185 = vmatmul.mubr.bf16.gmra.mrb[36].mxu1 %v1070_v7  ;;  %v1061_v31 = vmax.f32 %v1029_v63, 0.0 }
 0x481   :  { %v1024_v3 = vadd.f32 %v2619_v22, %v1023_v29  ;;  %v1059_v10 = vmax.f32 %v1021_v1, 0.0 }
 0x482   :  { %v1062_v17 = vmax.f32 %v1032_v2, 0.0 }
 0x483   :  { %v1060_v45 = vmax.f32 %v1024_v3, 0.0 }
 0x484   :  { %v1072_v46 = vpack.c.bf16 %v1062_v17, %v1061_v31 }
 0x485   :  { %v1071_v47 = vpack.c.bf16 %v1060_v45, %v1059_v10  ;;  %v3162_v48 = vpop.f32.mrb[44].mxu0 }
 0x486   :  { %v1045_v11 = vadd.f32 %v3162_v48, %v2619_v22  ;;  %v1036_v12 = vpop.f32.mrb[45].mxu0 }
 0x487   :  { %v1037_v13 = vadd.f32 %v2619_v22, %v1036_v12  ;;  %v3163_v15 = vpop.f32.mrb[46].mxu0  ;;  %3188 = vmatprep.mubr.bf16.mxu1 %v1071_v47 }
 0x488   :  { %v1048_v23 = vadd.f32 %v3163_v15, %v2619_v22  ;;  %v1039_v24 = vpop.f32.mrb[47].mxu0  ;;  %3189 = vmatmul.mubr.bf16.gmra.mrb[40].mxu1 %v1072_v46  ;;  %v1065_v26 = vmax.f32 %v1045_v11, 0.0 }
 0x489   :  { %v1040_v25 = vadd.f32 %v2619_v22, %v1039_v24  ;;  %v1063_v33 = vmax.f32 %v1037_v13, 0.0  ;;  %v3452_v22 = vld [vmem:[%s4374_s3 + $0xc0] sm:$0xff]  }
 0x48a   :  { %v1066_v27 = vmax.f32 %v1048_v23, 0.0  ;;  %3228 = vmatprep.subr.bf16.mxu1 %v3452_v22 }
 0x48b   :  { %v1064_v18 = vmax.f32 %v1040_v25, 0.0  ;;  %3229 = vmatpush3.bf16.msra.mxu1 %v3452_v22 }
 0x48c   :  { %v1074_v36 = vpack.c.bf16 %v1066_v27, %v1065_v26  ;;  %3230 = vmatprep.subr.bf16.mxu1 %v3453_v41 }
 0x48d   :  { %v1073_v37 = vpack.c.bf16 %v1064_v18, %v1063_v33 }
 0x48f   :  { %3192 = vmatprep.mubr.bf16.mxu1 %v1073_v37  ;;  %3231 = vmatpush3.bf16.msra.mxu1 %v3453_v41 }
 0x490   :  { %3193 = vmatmul.mubr.bf16.gmra.mrb[44].mxu1 %v1074_v36  ;;  %3232 = vmatprep.subr.bf16.mxu1 %v3454_v53 }
 0x493   :  { %3233 = vmatpush3.bf16.msra.mxu1 %v3454_v53 }
 0x494   :  { %3234 = vmatprep.subr.bf16.mxu1 %v3455_v42 }
 0x497   :  { %3235 = vmatpush3.bf16.msra.mxu1 %v3455_v42  ;;  %v3462_v42 = vld [vmem:[%s4372_s1 + $0x110] sm:$0xff]  }
 0x498   :  { %3236 = vmatprep.subr.bf16.mxu1 %v3456_v51 }
 0x49b   :  { %3237 = vmatpush3.bf16.msra.mxu1 %v3456_v51  ;;  %v3463_v51 = vld [vmem:[%s4372_s1 + $0x118] sm:$0xff]  }
 0x49c   :  { %3238 = vmatprep.subr.bf16.mxu1 %v3457_v43 }
 0x49f   :  { %3239 = vmatpush3.bf16.msra.mxu1 %v3457_v43  ;;  %v3464_v43 = vld [vmem:[%s4372_s1 + $0x120] sm:$0xff]  }
 0x54b   :  { %v3182_v39 = vpop.f32.mrb[32].mxu1 }
 0x54c   :  { %v1182_v49 = vpop.f32.mrb[33].mxu1  ;;  %v1191_v4 = vadd.f32 %v3182_v39, %v2645_v54  ;;  %v2671_v39 = vld [vmem:[%s4375_s2 + $0x3] ss:$0 sm:$0xff] }
 0x54d   :  { %v1183_v50 = vadd.f32 %v2645_v54, %v1182_v49  ;;  %v3183_v52 = vpop.f32.mrb[34].mxu1 }
 0x54e   :  { %v1194_v5 = vadd.f32 %v3183_v52, %v2645_v54  ;;  %v1185_v56 = vpop.f32.mrb[35].mxu1  ;;  %v3948_v62 = vadd.f32 %v1191_v4, %v3830_v35 }
 0x54f   :  { %v1186_v6 = vadd.f32 %v2645_v54, %v1185_v56  ;;  %v3942_v7 = vadd.f32 %v1183_v50, %v3824_v30 }
 0x550   :  { %v3939_v14 = vadd.f32 %v1194_v5, %v3821_v19 }
 0x551   :  { %v3945_v61 = vadd.f32 %v1186_v6, %v3827_v34 }
 0x552   :  { %v1262_v1 = vpack.c.bf16 %v3939_v14, %v3948_v62 }
 0x553   :  { %v3186_v63 = vpop.f32.mrb[36].mxu1  ;;  %v1261_v0 = vpack.c.bf16 %v3945_v61, %v3942_v7 }
 0x554   :  { %v1198_v28 = vpop.f32.mrb[37].mxu1  ;;  %v1207_v29 = vadd.f32 %v3186_v63, %v2645_v54 }
 0x555   :  { %v1199_v2 = vadd.f32 %v2645_v54, %v1198_v28  ;;  %v3187_v19 = vpop.f32.mrb[38].mxu1  ;;  %3212 = vmatprep.mubr.bf16.mxu0 %v1261_v0 }
 0x556   :  { %v1210_v30 = vadd.f32 %v3187_v19, %v2645_v54  ;;  %v1201_v3 = vpop.f32.mrb[39].mxu1  ;;  %3213 = vmatmul.mubr.bf16.vlgmr.msra.gmra.mrb[48].mxu0 %v1262_v1  ;;  %v3964_v10 = vadd.f32 %v1207_v29, %v3846_v21 }
 0x557   :  { %v1202_v34 = vadd.f32 %v2645_v54, %v1201_v3  ;;  %v3958_v35 = vadd.f32 %v1199_v2, %v3840_v55 }
 0x558   :  { %v3955_v31 = vadd.f32 %v1210_v30, %v3837_v44 }
 0x559   :  { %v3961_v17 = vadd.f32 %v1202_v34, %v3843_v20 }
 0x55a   :  { %v1264_v48 = vpack.c.bf16 %v3955_v31, %v3964_v10 }
 0x55b   :  { %v3190_v45 = vpop.f32.mrb[40].mxu1  ;;  %v1263_v46 = vpack.c.bf16 %v3961_v17, %v3958_v35 }
 0x55c   :  { %v1214_v47 = vpop.f32.mrb[41].mxu1  ;;  %v1223_v12 = vadd.f32 %v3190_v45, %v2645_v54 }
 0x55d   :  { %v1215_v11 = vadd.f32 %v2645_v54, %v1214_v47  ;;  %v3191_v44 = vpop.f32.mrb[42].mxu1  ;;  %3216 = vmatprep.mubr.bf16.mxu0 %v1263_v46 }
 0x55e   :  { %v1226_v55 = vadd.f32 %v3191_v44, %v2645_v54  ;;  %v1217_v13 = vpop.f32.mrb[43].mxu1  ;;  %3217 = vmatmul.mubr.bf16.gmra.mrb[52].mxu0 %v1264_v48  ;;  %v3980_v24 = vadd.f32 %v1223_v12, %v3862_v60 }
 0x55f   :  { %v1218_v20 = vadd.f32 %v2645_v54, %v1217_v13  ;;  %v3974_v21 = vadd.f32 %v1215_v11, %v3856_v8 }
 0x560   :  { %v3971_v15 = vadd.f32 %v1226_v55, %v3853_v57 }
 0x561   :  { %v3977_v23 = vadd.f32 %v1218_v20, %v3859_v59 }
 0x562   :  { %v1266_v33 = vpack.c.bf16 %v3971_v15, %v3980_v24 }
 0x563   :  { %v3194_v25 = vpop.f32.mrb[44].mxu1  ;;  %v1265_v26 = vpack.c.bf16 %v3977_v23, %v3974_v21 }
 0x564   :  { %v1230_v27 = vpop.f32.mrb[45].mxu1  ;;  %v1239_v36 = vadd.f32 %v3194_v25, %v2645_v54 }
 0x565   :  { %v1231_v18 = vadd.f32 %v2645_v54, %v1230_v27  ;;  %v3195_v57 = vpop.f32.mrb[46].mxu1  ;;  %3220 = vmatprep.mubr.bf16.mxu0 %v1265_v26 }
 0x566   :  { %v1242_v8 = vadd.f32 %v3195_v57, %v2645_v54  ;;  %v1233_v37 = vpop.f32.mrb[47].mxu1  ;;  %3221 = vmatmul.mubr.bf16.gmra.mrb[56].mxu0 %v1266_v33  ;;  %v3996_v22 = vadd.f32 %v1239_v36, %v3878_v58  ;;  %v3461_v58 = vld [vmem:[%s4372_s1 + $0x108] sm:$0xff]  }
 0x567   :  { %v1234_v59 = vadd.f32 %v2645_v54, %v1233_v37  ;;  %v3990_v60 = vadd.f32 %v1231_v18, %v3872_v32  ;;  %v3459_v32 = vld [vmem:[%s4374_s3 + $0xf8] sm:$0xff]   ;;  %v3465_v54 = vld [vmem:[%s4372_s1 + $0x128] sm:$0xff]  }
 0x568   :  { %v3987_v38 = vadd.f32 %v1242_v8, %v3869_v9  ;;  %v3458_v9 = vld [vmem:[%s4374_s3 + $0xf0] sm:$0xff]  }
 0x569   :  { %v3993_v40 = vadd.f32 %v1234_v59, %v3875_v16  ;;  %3240 = vmatprep.subr.bf16.mxu1 %v3458_v9  ;;  %v3460_v16 = vld [vmem:[%s4372_s1 + $0x100] sm:$0xff]  }
 0x56a   :  { %v1268_v53 = vpack.c.bf16 %v3987_v38, %v3996_v22  ;;  %3241 = vmatpush3.bf16.msra.mxu1 %v3458_v9  ;;  %3260 = vmatprep.subr.bf16.mxu0 %v3460_v16 }
 0x56b   :  { %v1267_v41 = vpack.c.bf16 %v3993_v40, %v3990_v60  ;;  %3242 = vmatprep.subr.bf16.mxu1 %v3459_v32  ;;  %3261 = vmatpush3.bf16.msra.mxu0 %v3460_v16 }
 0x56c   :  { %3262 = vmatprep.subr.bf16.mxu0 %v3461_v58 }
 0x56d   :  { %3224 = vmatprep.mubr.bf16.mxu0 %v1267_v41 }
 0x56e   :  { %3225 = vmatmul.mubr.bf16.gmra.mrb[60].mxu0 %v1268_v53  ;;  %3243 = vmatpush3.bf16.msra.mxu1 %v3459_v32 }
 0x56f   :  { %3263 = vmatpush3.bf16.msra.mxu0 %v3461_v58 }
 0x570   :  { %3264 = vmatprep.subr.bf16.mxu0 %v3462_v42 }
 0x573   :  { %3265 = vmatpush3.bf16.msra.mxu0 %v3462_v42 }
 0x574   :  { %3266 = vmatprep.subr.bf16.mxu0 %v3463_v51 }
 0x577   :  { %3267 = vmatpush3.bf16.msra.mxu0 %v3463_v51 }
 0x578   :  { %3268 = vmatprep.subr.bf16.mxu0 %v3464_v43 }
 0x57b   :  { %3269 = vmatpush3.bf16.msra.mxu0 %v3464_v43 }
 0x57c   :  { %3270 = vmatprep.subr.bf16.mxu0 %v3465_v54 }
 0x57f   :  { %3271 = vmatpush3.bf16.msra.mxu0 %v3465_v54 }
 0x629   :  { %v3214_v49 = vpop.f32.mrb[48].mxu0 }
 0x62a   :  { %v1385_v50 = vadd.f32 %v3214_v49, %v2671_v39  ;;  %v1376_v52 = vpop.f32.mrb[49].mxu0 }
 0x62b   :  { %v1377_v4 = vadd.f32 %v2671_v39, %v1376_v52  ;;  %v3215_v5 = vpop.f32.mrb[50].mxu0 }
 0x62c   :  { %v1388_v56 = vadd.f32 %v3215_v5, %v2671_v39  ;;  %v1379_v6 = vpop.f32.mrb[51].mxu0  ;;  %v1441_v0 = vmax.f32 %v1385_v50, 0.0 }
 0x62d   :  { %v1380_v63 = vadd.f32 %v2671_v39, %v1379_v6  ;;  %v1439_v28 = vmax.f32 %v1377_v4, 0.0 }
 0x62e   :  { %v1442_v1 = vmax.f32 %v1388_v56, 0.0 }
 0x62f   :  { %v1440_v2 = vmax.f32 %v1380_v63, 0.0 }
 0x630   :  { %v1456_v19 = vpack.c.bf16 %v1442_v1, %v1441_v0  ;;  %v3466_v1 = vld [vmem:[%s4372_s1 + $0x130] sm:$0xff]  }
 0x631   :  { %v1455_v29 = vpack.c.bf16 %v1440_v2, %v1439_v28  ;;  %v3218_v30 = vpop.f32.mrb[52].mxu0  ;;  %3272 = vmatprep.subr.bf16.mxu0 %v3466_v1  ;;  %v3467_v28 = vld [vmem:[%s4372_s1 + $0x138] sm:$0xff]   ;;  %v3469_v2 = vld [vmem:[%s4374_s3 + $0x108] sm:$0xff]  }
 0x632   :  { %v1401_v3 = vadd.f32 %v3218_v30, %v2671_v39  ;;  %v1392_v34 = vpop.f32.mrb[53].mxu0  ;;  %3273 = vmatpush3.bf16.msra.mxu0 %v3466_v1  ;;  %v3472_v30 = vld [vmem:[%s4374_s3 + $0x120] sm:$0xff]  }
 0x633   :  { %v1393_v45 = vadd.f32 %v2671_v39, %v1392_v34  ;;  %v3219_v46 = vpop.f32.mrb[54].mxu0  ;;  %3244 = vmatprep.mubr.bf16.mxu1 %v1455_v29  ;;  %3274 = vmatprep.subr.bf16.mxu0 %v3467_v28  ;;  %v3471_v29 = vld [vmem:[%s4374_s3 + $0x118] sm:$0xff]   ;;  %v2697_v34 = vld [vmem:[%s4376_s4 + $0x3] ss:$0 sm:$0xff] }
 0x634   :  { %v1404_v47 = vadd.f32 %v3219_v46, %v2671_v39  ;;  %v1395_v48 = vpop.f32.mrb[55].mxu0  ;;  %3245 = vmatmul.mubr.bf16.vlgmr.msra.gmra.mrb[48].mxu1 %v1456_v19  ;;  %v1445_v44 = vmax.f32 %v1401_v3, 0.0  ;;  %v3470_v19 = vld [vmem:[%s4374_s3 + $0x110] sm:$0xff]   ;;  %v3473_v3 = vld [vmem:[%s4374_s3 + $0x128] sm:$0xff]  }
 0x635   :  { %v1396_v11 = vadd.f32 %v2671_v39, %v1395_v48  ;;  %v1443_v55 = vmax.f32 %v1393_v45, 0.0 }
 0x636   :  { %v1446_v12 = vmax.f32 %v1404_v47, 0.0  ;;  %3275 = vmatpush3.bf16.msra.mxu0 %v3467_v28 }
 0x637   :  { %v1444_v13 = vmax.f32 %v1396_v11, 0.0 }
 0x638   :  { %v1458_v20 = vpack.c.bf16 %v1446_v12, %v1445_v44 }
 0x639   :  { %v1457_v25 = vpack.c.bf16 %v1444_v13, %v1443_v55  ;;  %v3222_v26 = vpop.f32.mrb[56].mxu0 }
 0x63a   :  { %v1417_v27 = vadd.f32 %v3222_v26, %v2671_v39  ;;  %v1408_v33 = vpop.f32.mrb[57].mxu0 }
 0x63b   :  { %v1409_v18 = vadd.f32 %v2671_v39, %v1408_v33  ;;  %v3223_v57 = vpop.f32.mrb[58].mxu0  ;;  %3248 = vmatprep.mubr.bf16.mxu1 %v1457_v25 }
 0x63c   :  { %v1420_v36 = vadd.f32 %v3223_v57, %v2671_v39  ;;  %v1411_v8 = vpop.f32.mrb[59].mxu0  ;;  %3249 = vmatmul.mubr.bf16.gmra.mrb[52].mxu1 %v1458_v20  ;;  %v1449_v59 = vmax.f32 %v1417_v27, 0.0 }
 0x63d   :  { %v1412_v37 = vadd.f32 %v2671_v39, %v1411_v8  ;;  %v1447_v53 = vmax.f32 %v1409_v18, 0.0 }
 0x63e   :  { %v1450_v41 = vmax.f32 %v1420_v36, 0.0 }
 0x63f   :  { %v1448_v9 = vmax.f32 %v1412_v37, 0.0 }
 0x640   :  { %v1460_v32 = vpack.c.bf16 %v1450_v41, %v1449_v59 }
 0x641   :  { %v1459_v16 = vpack.c.bf16 %v1448_v9, %v1447_v53  ;;  %v3226_v58 = vpop.f32.mrb[60].mxu0 }
 0x642   :  { %v1433_v42 = vadd.f32 %v3226_v58, %v2671_v39  ;;  %v1424_v51 = vpop.f32.mrb[61].mxu0 }
 0x643   :  { %v1425_v43 = vadd.f32 %v2671_v39, %v1424_v51  ;;  %v3227_v54 = vpop.f32.mrb[62].mxu0  ;;  %3252 = vmatprep.mubr.bf16.mxu1 %v1459_v16 }
 0x644   :  { %v1436_v49 = vadd.f32 %v3227_v54, %v2671_v39  ;;  %v1427_v50 = vpop.f32.mrb[63].mxu0  ;;  %3253 = vmatmul.mubr.bf16.gmra.mrb[56].mxu1 %v1460_v32  ;;  %v1453_v4 = vmax.f32 %v1433_v42, 0.0 }
 0x645   :  { %v1428_v52 = vadd.f32 %v2671_v39, %v1427_v50  ;;  %v1451_v56 = vmax.f32 %v1425_v43, 0.0  ;;  %v3468_v39 = vld [vmem:[%s4374_s3 + $0x100] sm:$0xff]  }
 0x646   :  { %v1454_v5 = vmax.f32 %v1436_v49, 0.0  ;;  %3292 = vmatprep.subr.bf16.mxu1 %v3468_v39 }
 0x647   :  { %v1452_v6 = vmax.f32 %v1428_v52, 0.0  ;;  %3293 = vmatpush3.bf16.msra.mxu1 %v3468_v39 }
 0x648   :  { %v1462_v63 = vpack.c.bf16 %v1454_v5, %v1453_v4  ;;  %3294 = vmatprep.subr.bf16.mxu1 %v3469_v2 }
 0x649   :  { %v1461_v0 = vpack.c.bf16 %v1452_v6, %v1451_v56 }
 0x64b   :  { %3256 = vmatprep.mubr.bf16.mxu1 %v1461_v0  ;;  %3295 = vmatpush3.bf16.msra.mxu1 %v3469_v2 }
 0x64c   :  { %3257 = vmatmul.mubr.bf16.gmra.mrb[60].mxu1 %v1462_v63  ;;  %3296 = vmatprep.subr.bf16.mxu1 %v3470_v19 }
 0x64f   :  { %3297 = vmatpush3.bf16.msra.mxu1 %v3470_v19 }
 0x650   :  { %3298 = vmatprep.subr.bf16.mxu1 %v3471_v29 }
 0x653   :  { %3299 = vmatpush3.bf16.msra.mxu1 %v3471_v29  ;;  %v3478_v29 = vld [vmem:[%s4372_s1 + $0x150] sm:$0xff]  }
 0x654   :  { %3300 = vmatprep.subr.bf16.mxu1 %v3472_v30 }
 0x657   :  { %3301 = vmatpush3.bf16.msra.mxu1 %v3472_v30  ;;  %v3479_v30 = vld [vmem:[%s4372_s1 + $0x158] sm:$0xff]  }
 0x658   :  { %3302 = vmatprep.subr.bf16.mxu1 %v3473_v3 }
 0x65b   :  { %3303 = vmatpush3.bf16.msra.mxu1 %v3473_v3  ;;  %v3480_v3 = vld [vmem:[%s4372_s1 + $0x160] sm:$0xff]  }
 0x707   :  { %v3246_v45 = vpop.f32.mrb[48].mxu1 }
 0x708   :  { %v1570_v46 = vpop.f32.mrb[49].mxu1  ;;  %v1579_v11 = vadd.f32 %v3246_v45, %v2697_v34  ;;  %v2723_v45 = vld [vmem:[%s4375_s2 + $0x4] ss:$0 sm:$0xff] }
 0x709   :  { %v1571_v47 = vadd.f32 %v2697_v34, %v1570_v46  ;;  %v3247_v48 = vpop.f32.mrb[50].mxu1 }
 0x70a   :  { %v1582_v44 = vadd.f32 %v3247_v48, %v2697_v34  ;;  %v1573_v12 = vpop.f32.mrb[51].mxu1  ;;  %v4066_v26 = vadd.f32 %v1579_v11, %v3948_v62 }
 0x70b   :  { %v1574_v55 = vadd.f32 %v2697_v34, %v1573_v12  ;;  %v4060_v20 = vadd.f32 %v1571_v47, %v3942_v7 }
 0x70c   :  { %v4057_v13 = vadd.f32 %v1582_v44, %v3939_v14 }
 0x70d   :  { %v4063_v25 = vadd.f32 %v1574_v55, %v3945_v61 }
 0x70e   :  { %v1650_v18 = vpack.c.bf16 %v4057_v13, %v4066_v26 }
 0x70f   :  { %v3250_v27 = vpop.f32.mrb[52].mxu1  ;;  %v1649_v33 = vpack.c.bf16 %v4063_v25, %v4060_v20 }
 0x710   :  { %v1586_v57 = vpop.f32.mrb[53].mxu1  ;;  %v1595_v8 = vadd.f32 %v3250_v27, %v2697_v34 }
 0x711   :  { %v1587_v36 = vadd.f32 %v2697_v34, %v1586_v57  ;;  %v3251_v14 = vpop.f32.mrb[54].mxu1  ;;  %3276 = vmatprep.mubr.bf16.mxu0 %v1649_v33 }
 0x712   :  { %v1598_v7 = vadd.f32 %v3251_v14, %v2697_v34  ;;  %v1589_v37 = vpop.f32.mrb[55].mxu1  ;;  %3277 = vmatmul.mubr.bf16.vlgmr.msra.gmra.mrb[64].mxu0 %v1650_v18  ;;  %v4082_v53 = vadd.f32 %v1595_v8, %v3964_v10 }
 0x713   :  { %v1590_v61 = vadd.f32 %v2697_v34, %v1589_v37  ;;  %v4076_v62 = vadd.f32 %v1587_v36, %v3958_v35 }
 0x714   :  { %v4073_v59 = vadd.f32 %v1598_v7, %v3955_v31 }
 0x715   :  { %v4079_v41 = vadd.f32 %v1590_v61, %v3961_v17 }
 0x716   :  { %v1652_v58 = vpack.c.bf16 %v4073_v59, %v4082_v53 }
 0x717   :  { %v3254_v9 = vpop.f32.mrb[56].mxu1  ;;  %v1651_v32 = vpack.c.bf16 %v4079_v41, %v4076_v62 }
 0x718   :  { %v1602_v16 = vpop.f32.mrb[57].mxu1  ;;  %v1611_v51 = vadd.f32 %v3254_v9, %v2697_v34 }
 0x719   :  { %v1603_v42 = vadd.f32 %v2697_v34, %v1602_v16  ;;  %v3255_v31 = vpop.f32.mrb[58].mxu1  ;;  %3280 = vmatprep.mubr.bf16.mxu0 %v1651_v32 }
 0x71a   :  { %v1614_v35 = vadd.f32 %v3255_v31, %v2697_v34  ;;  %v1605_v43 = vpop.f32.mrb[59].mxu1  ;;  %3281 = vmatmul.mubr.bf16.gmra.mrb[68].mxu0 %v1652_v58  ;;  %v4098_v50 = vadd.f32 %v1611_v51, %v3980_v24 }
 0x71b   :  { %v1606_v17 = vadd.f32 %v2697_v34, %v1605_v43  ;;  %v4092_v10 = vadd.f32 %v1603_v42, %v3974_v21 }
 0x71c   :  { %v4089_v54 = vadd.f32 %v1614_v35, %v3971_v15 }
 0x71d   :  { %v4095_v49 = vadd.f32 %v1606_v17, %v3977_v23 }
 0x71e   :  { %v1654_v56 = vpack.c.bf16 %v4089_v54, %v4098_v50 }
 0x71f   :  { %v3258_v52 = vpop.f32.mrb[60].mxu1  ;;  %v1653_v4 = vpack.c.bf16 %v4095_v49, %v4092_v10 }
 0x720   :  { %v1618_v5 = vpop.f32.mrb[61].mxu1  ;;  %v1627_v63 = vadd.f32 %v3258_v52, %v2697_v34 }
 0x721   :  { %v1619_v6 = vadd.f32 %v2697_v34, %v1618_v5  ;;  %v3259_v15 = vpop.f32.mrb[62].mxu1  ;;  %3284 = vmatprep.mubr.bf16.mxu0 %v1653_v4 }
 0x722   :  { %v1630_v21 = vadd.f32 %v3259_v15, %v2697_v34  ;;  %v1621_v0 = vpop.f32.mrb[63].mxu1  ;;  %3285 = vmatmul.mubr.bf16.gmra.mrb[72].mxu0 %v1654_v56  ;;  %v4114_v39 = vadd.f32 %v1627_v63, %v3996_v22  ;;  %v3477_v22 = vld [vmem:[%s4372_s1 + $0x148] sm:$0xff]  }
 0x723   :  { %v1622_v23 = vadd.f32 %v2697_v34, %v1621_v0  ;;  %v4108_v24 = vadd.f32 %v1619_v6, %v3990_v60  ;;  %v3475_v60 = vld [vmem:[%s4374_s3 + $0x138] sm:$0xff]   ;;  %v3481_v34 = vld [vmem:[%s4372_s1 + $0x168] sm:$0xff]  }
 0x724   :  { %v4105_v1 = vadd.f32 %v1630_v21, %v3987_v38  ;;  %v3474_v38 = vld [vmem:[%s4374_s3 + $0x130] sm:$0xff]  }
 0x725   :  { %v4111_v28 = vadd.f32 %v1622_v23, %v3993_v40  ;;  %3304 = vmatprep.subr.bf16.mxu1 %v3474_v38  ;;  %v3476_v40 = vld [vmem:[%s4372_s1 + $0x140] sm:$0xff]  }
 0x726   :  { %v1656_v19 = vpack.c.bf16 %v4105_v1, %v4114_v39  ;;  %3305 = vmatpush3.bf16.msra.mxu1 %v3474_v38  ;;  %3324 = vmatprep.subr.bf16.mxu0 %v3476_v40 }
 0x727   :  { %v1655_v2 = vpack.c.bf16 %v4111_v28, %v4108_v24  ;;  %3306 = vmatprep.subr.bf16.mxu1 %v3475_v60  ;;  %3325 = vmatpush3.bf16.msra.mxu0 %v3476_v40 }
 0x728   :  { %3326 = vmatprep.subr.bf16.mxu0 %v3477_v22 }
 0x729   :  { %3288 = vmatprep.mubr.bf16.mxu0 %v1655_v2 }
 0x72a   :  { %3289 = vmatmul.mubr.bf16.gmra.mrb[76].mxu0 %v1656_v19  ;;  %3307 = vmatpush3.bf16.msra.mxu1 %v3475_v60 }
 0x72b   :  { %3327 = vmatpush3.bf16.msra.mxu0 %v3477_v22 }
 0x72c   :  { %3328 = vmatprep.subr.bf16.mxu0 %v3478_v29 }
 0x72f   :  { %3329 = vmatpush3.bf16.msra.mxu0 %v3478_v29 }
 0x730   :  { %3330 = vmatprep.subr.bf16.mxu0 %v3479_v30 }
 0x733   :  { %3331 = vmatpush3.bf16.msra.mxu0 %v3479_v30 }
 0x734   :  { %3332 = vmatprep.subr.bf16.mxu0 %v3480_v3 }
 0x737   :  { %3333 = vmatpush3.bf16.msra.mxu0 %v3480_v3 }
 0x738   :  { %3334 = vmatprep.subr.bf16.mxu0 %v3481_v34 }
 0x73b   :  { %3335 = vmatpush3.bf16.msra.mxu0 %v3481_v34 }
 0x7e5   :  { %v3278_v46 = vpop.f32.mrb[64].mxu0 }
 0x7e6   :  { %v1773_v47 = vadd.f32 %v3278_v46, %v2723_v45  ;;  %v1764_v48 = vpop.f32.mrb[65].mxu0 }
 0x7e7   :  { %v1765_v11 = vadd.f32 %v2723_v45, %v1764_v48  ;;  %v3279_v44 = vpop.f32.mrb[66].mxu0 }
 0x7e8   :  { %v1776_v12 = vadd.f32 %v3279_v44, %v2723_v45  ;;  %v1767_v55 = vpop.f32.mrb[67].mxu0  ;;  %v1829_v33 = vmax.f32 %v1773_v47, 0.0 }
 0x7e9   :  { %v1768_v27 = vadd.f32 %v2723_v45, %v1767_v55  ;;  %v1827_v57 = vmax.f32 %v1765_v11, 0.0 }
 0x7ea   :  { %v1830_v18 = vmax.f32 %v1776_v12, 0.0 }
 0x7eb   :  { %v1828_v36 = vmax.f32 %v1768_v27, 0.0 }
 0x7ec   :  { %v1844_v14 = vpack.c.bf16 %v1830_v18, %v1829_v33  ;;  %v3482_v18 = vld [vmem:[%s4372_s1 + $0x170] sm:$0xff]  }
 0x7ed   :  { %v1843_v8 = vpack.c.bf16 %v1828_v36, %v1827_v57  ;;  %v3282_v7 = vpop.f32.mrb[68].mxu0  ;;  %3336 = vmatprep.subr.bf16.mxu0 %v3482_v18  ;;  %v3483_v57 = vld [vmem:[%s4372_s1 + $0x178] sm:$0xff]   ;;  %v3485_v36 = vld [vmem:[%s4374_s3 + $0x148] sm:$0xff]  }
 0x7ee   :  { %v1789_v37 = vadd.f32 %v3282_v7, %v2723_v45  ;;  %v1780_v61 = vpop.f32.mrb[69].mxu0  ;;  %3337 = vmatpush3.bf16.msra.mxu0 %v3482_v18  ;;  %v3488_v7 = vld [vmem:[%s4374_s3 + $0x160] sm:$0xff]  }
 0x7ef   :  { %v1781_v9 = vadd.f32 %v2723_v45, %v1780_v61  ;;  %v3283_v32 = vpop.f32.mrb[70].mxu0  ;;  %3308 = vmatprep.mubr.bf16.mxu1 %v1843_v8  ;;  %3338 = vmatprep.subr.bf16.mxu0 %v3483_v57  ;;  %v3487_v8 = vld [vmem:[%s4374_s3 + $0x158] sm:$0xff]   ;;  %v2749_v61 = vld [vmem:[%s4376_s4 + $0x4] ss:$0 sm:$0xff] }
 0x7f0   :  { %v1792_v16 = vadd.f32 %v3283_v32, %v2723_v45  ;;  %v1783_v58 = vpop.f32.mrb[71].mxu0  ;;  %3309 = vmatmul.mubr.bf16.vlgmr.msra.gmra.mrb[64].mxu1 %v1844_v14  ;;  %v1833_v31 = vmax.f32 %v1789_v37, 0.0  ;;  %v3486_v14 = vld [vmem:[%s4374_s3 + $0x150] sm:$0xff]   ;;  %v3489_v37 = vld [vmem:[%s4374_s3 + $0x168] sm:$0xff]  }
 0x7f1   :  { %v1784_v42 = vadd.f32 %v2723_v45, %v1783_v58  ;;  %v1831_v35 = vmax.f32 %v1781_v9, 0.0 }
 0x7f2   :  { %v1834_v51 = vmax.f32 %v1792_v16, 0.0  ;;  %3339 = vmatpush3.bf16.msra.mxu0 %v3483_v57 }
 0x7f3   :  { %v1832_v43 = vmax.f32 %v1784_v42, 0.0 }
 0x7f4   :  { %v1846_v17 = vpack.c.bf16 %v1834_v51, %v1833_v31 }
 0x7f5   :  { %v1845_v52 = vpack.c.bf16 %v1832_v43, %v1831_v35  ;;  %v3286_v4 = vpop.f32.mrb[72].mxu0 }
 0x7f6   :  { %v1805_v5 = vadd.f32 %v3286_v4, %v2723_v45  ;;  %v1796_v56 = vpop.f32.mrb[73].mxu0 }
 0x7f7   :  { %v1797_v6 = vadd.f32 %v2723_v45, %v1796_v56  ;;  %v3287_v15 = vpop.f32.mrb[74].mxu0  ;;  %3312 = vmatprep.mubr.bf16.mxu1 %v1845_v52 }
 0x7f8   :  { %v1808_v63 = vadd.f32 %v3287_v15, %v2723_v45  ;;  %v1799_v21 = vpop.f32.mrb[75].mxu0  ;;  %3313 = vmatmul.mubr.bf16.gmra.mrb[68].mxu1 %v1846_v17  ;;  %v1837_v23 = vmax.f32 %v1805_v5, 0.0 }
 0x7f9   :  { %v1800_v0 = vadd.f32 %v2723_v45, %v1799_v21  ;;  %v1835_v19 = vmax.f32 %v1797_v6, 0.0 }
 0x7fa   :  { %v1838_v2 = vmax.f32 %v1808_v63, 0.0 }
 0x7fb   :  { %v1836_v38 = vmax.f32 %v1800_v0, 0.0 }
 0x7fc   :  { %v1848_v60 = vpack.c.bf16 %v1838_v2, %v1837_v23 }
 0x7fd   :  { %v1847_v40 = vpack.c.bf16 %v1836_v38, %v1835_v19  ;;  %v3290_v22 = vpop.f32.mrb[76].mxu0 }
 0x7fe   :  { %v1821_v29 = vadd.f32 %v3290_v22, %v2723_v45  ;;  %v1812_v30 = vpop.f32.mrb[77].mxu0 }
 0x7ff   :  { %v1813_v3 = vadd.f32 %v2723_v45, %v1812_v30  ;;  %v3291_v34 = vpop.f32.mrb[78].mxu0  ;;  %3316 = vmatprep.mubr.bf16.mxu1 %v1847_v40 }
 0x800   :  { %v1824_v46 = vadd.f32 %v3291_v34, %v2723_v45  ;;  %v1815_v47 = vpop.f32.mrb[79].mxu0  ;;  %3317 = vmatmul.mubr.bf16.gmra.mrb[72].mxu1 %v1848_v60  ;;  %v1841_v11 = vmax.f32 %v1821_v29, 0.0 }
 0x801   :  { %v1816_v48 = vadd.f32 %v2723_v45, %v1815_v47  ;;  %v1839_v12 = vmax.f32 %v1813_v3, 0.0  ;;  %v3484_v45 = vld [vmem:[%s4374_s3 + $0x140] sm:$0xff]  }
 0x802   :  { %v1842_v44 = vmax.f32 %v1824_v46, 0.0  ;;  %3356 = vmatprep.subr.bf16.mxu1 %v3484_v45 }
 0x803   :  { %v1840_v55 = vmax.f32 %v1816_v48, 0.0  ;;  %3357 = vmatpush3.bf16.msra.mxu1 %v3484_v45 }
 0x804   :  { %v1850_v27 = vpack.c.bf16 %v1842_v44, %v1841_v11  ;;  %3358 = vmatprep.subr.bf16.mxu1 %v3485_v36 }
 0x805   :  { %v1849_v33 = vpack.c.bf16 %v1840_v55, %v1839_v12 }
 0x807   :  { %3320 = vmatprep.mubr.bf16.mxu1 %v1849_v33  ;;  %3359 = vmatpush3.bf16.msra.mxu1 %v3485_v36 }
 0x808   :  { %3321 = vmatmul.mubr.bf16.gmra.mrb[76].mxu1 %v1850_v27  ;;  %3360 = vmatprep.subr.bf16.mxu1 %v3486_v14 }
 0x80b   :  { %3361 = vmatpush3.bf16.msra.mxu1 %v3486_v14 }
 0x80c   :  { %3362 = vmatprep.subr.bf16.mxu1 %v3487_v8 }
 0x80f   :  { %3363 = vmatpush3.bf16.msra.mxu1 %v3487_v8 }
 0x810   :  { %3364 = vmatprep.subr.bf16.mxu1 %v3488_v7 }
 0x813   :  { %3365 = vmatpush3.bf16.msra.mxu1 %v3488_v7 }
 0x814   :  { %3366 = vmatprep.subr.bf16.mxu1 %v3489_v37 }
 0x817   :  { %3367 = vmatpush3.bf16.msra.mxu1 %v3489_v37 }
 0x8c3   :  { %v3310_v9 = vpop.f32.mrb[64].mxu1 }
 0x8c4   :  { %v1958_v32 = vpop.f32.mrb[65].mxu1  ;;  %v1967_v42 = vadd.f32 %v3310_v9, %v2749_v61 }
 0x8c5   :  { %v1959_v16 = vadd.f32 %v2749_v61, %v1958_v32  ;;  %v3311_v58 = vpop.f32.mrb[66].mxu1 }
 0x8c6   :  { %v1970_v31 = vadd.f32 %v3311_v58, %v2749_v61  ;;  %v1961_v51 = vpop.f32.mrb[67].mxu1  ;;  %v4184_v4 = vadd.f32 %v1967_v42, %v4066_v26 }
 0x8c7   :  { %v1962_v35 = vadd.f32 %v2749_v61, %v1961_v51  ;;  %v4178_v17 = vadd.f32 %v1959_v16, %v4060_v20 }
 0x8c8   :  { %v4175_v43 = vadd.f32 %v1970_v31, %v4057_v13 }
 0x8c9   :  { %v4181_v52 = vadd.f32 %v1962_v35, %v4063_v25 }
 0x8ca   :  { %v2038_v6 = vpack.c.bf16 %v4175_v43, %v4184_v4 }
 0x8cb   :  { %v3314_v5 = vpop.f32.mrb[68].mxu1  ;;  %v2037_v56 = vpack.c.bf16 %v4181_v52, %v4178_v17 }
 0x8cc   :  { %v1974_v15 = vpop.f32.mrb[69].mxu1  ;;  %v1983_v21 = vadd.f32 %v3314_v5, %v2749_v61 }
 0x8cd   :  { %v1975_v63 = vadd.f32 %v2749_v61, %v1974_v15  ;;  %v3315_v13 = vpop.f32.mrb[70].mxu1  ;;  %3340 = vmatprep.mubr.bf16.mxu0 %v2037_v56 }
 0x8ce   :  { %v1986_v20 = vadd.f32 %v3315_v13, %v2749_v61  ;;  %v1977_v0 = vpop.f32.mrb[71].mxu1  ;;  %3341 = vmatmul.mubr.bf16.vlgmr.msra.gmra.mrb[80].mxu0 %v2038_v6  ;;  %v4200_v19 = vadd.f32 %v1983_v21, %v4082_v53 }
 0x8cf   :  { %v1978_v25 = vadd.f32 %v2749_v61, %v1977_v0  ;;  %v4194_v26 = vadd.f32 %v1975_v63, %v4076_v62 }
 0x8d0   :  { %v4191_v23 = vadd.f32 %v1986_v20, %v4073_v59 }
 0x8d1   :  { %v4197_v2 = vadd.f32 %v1978_v25, %v4079_v41 }
 0x8d2   :  { %v2040_v22 = vpack.c.bf16 %v4191_v23, %v4200_v19 }
 0x8d3   :  { %v3318_v38 = vpop.f32.mrb[72].mxu1  ;;  %v2039_v60 = vpack.c.bf16 %v4197_v2, %v4194_v26 }
 0x8d4   :  { %v1990_v40 = vpop.f32.mrb[73].mxu1  ;;  %v1999_v30 = vadd.f32 %v3318_v38, %v2749_v61 }
 0x8d5   :  { %v1991_v29 = vadd.f32 %v2749_v61, %v1990_v40  ;;  %v3319_v59 = vpop.f32.mrb[74].mxu1  ;;  %3344 = vmatprep.mubr.bf16.mxu0 %v2039_v60 }
 0x8d6   :  { %v2002_v62 = vadd.f32 %v3319_v59, %v2749_v61  ;;  %v1993_v3 = vpop.f32.mrb[75].mxu1  ;;  %3345 = vmatmul.mubr.bf16.gmra.mrb[84].mxu0 %v2040_v22  ;;  %v4216_v47 = vadd.f32 %v1999_v30, %v4098_v50 }
 0x8d7   :  { %v1994_v41 = vadd.f32 %v2749_v61, %v1993_v3  ;;  %v4210_v53 = vadd.f32 %v1991_v29, %v4092_v10 }
 0x8d8   :  { %v4207_v34 = vadd.f32 %v2002_v62, %v4089_v54 }
 0x8d9   :  { %v4213_v46 = vadd.f32 %v1994_v41, %v4095_v49 }
 0x8da   :  { %v2042_v12 = vpack.c.bf16 %v4207_v34, %v4216_v47 }
 0x8db   :  { %v3322_v48 = vpop.f32.mrb[76].mxu1  ;;  %v2041_v11 = vpack.c.bf16 %v4213_v46, %v4210_v53 }
 0x8dc   :  { %v2006_v44 = vpop.f32.mrb[77].mxu1  ;;  %v2015_v27 = vadd.f32 %v3322_v48, %v2749_v61 }
 0x8dd   :  { %v2007_v55 = vadd.f32 %v2749_v61, %v2006_v44  ;;  %v3323_v54 = vpop.f32.mrb[78].mxu1  ;;  %3348 = vmatprep.mubr.bf16.mxu0 %v2041_v11 }
 0x8de   :  { %v2018_v10 = vadd.f32 %v3323_v54, %v2749_v61  ;;  %v2009_v33 = vpop.f32.mrb[79].mxu1  ;;  %3349 = vmatmul.mubr.bf16.gmra.mrb[88].mxu0 %v2042_v12  ;;  %v4232_v45 = vadd.f32 %v2015_v27, %v4114_v39 }
 0x8df   :  { %v2010_v49 = vadd.f32 %v2749_v61, %v2009_v33  ;;  %v4226_v50 = vadd.f32 %v2007_v55, %v4108_v24  ;;  %v3491_v24 = vld [vmem:[%s4374_s3 + $0x178] sm:$0xff]  }
 0x8e0   :  { %v4223_v18 = vadd.f32 %v2018_v10, %v4105_v1  ;;  %v3490_v1 = vld [vmem:[%s4374_s3 + $0x170] sm:$0xff]  }
 0x8e1   :  { %v4229_v57 = vadd.f32 %v2010_v49, %v4111_v28  ;;  %3368 = vmatprep.subr.bf16.mxu1 %v3490_v1  ;;  %v2775_v28 = vld [vmem:[%s4375_s2 + $0x5] ss:$0 sm:$0xff] }
 0x8e2   :  { %v2044_v14 = vpack.c.bf16 %v4223_v18, %v4232_v45  ;;  %3369 = vmatpush3.bf16.msra.mxu1 %v3490_v1 }
 0x8e3   :  { %v2043_v36 = vpack.c.bf16 %v4229_v57, %v4226_v50  ;;  %3370 = vmatprep.subr.bf16.mxu1 %v3491_v24 }
 0x8e5   :  { %3352 = vmatprep.mubr.bf16.mxu0 %v2043_v36 }
 0x8e6   :  { %3353 = vmatmul.mubr.bf16.gmra.mrb[92].mxu0 %v2044_v14  ;;  %3371 = vmatpush3.bf16.msra.mxu1 %v3491_v24 }
 0x9a1   :  { %v3342_v39 = vpop.f32.mrb[80].mxu0 }
 0x9a2   :  { %v2161_v8 = vadd.f32 %v3342_v39, %v2775_v28  ;;  %v2152_v7 = vpop.f32.mrb[81].mxu0 }
 0x9a3   :  { %v2153_v37 = vadd.f32 %v2775_v28, %v2152_v7  ;;  %v3343_v61 = vpop.f32.mrb[82].mxu0 }
 0x9a4   :  { %v2164_v9 = vadd.f32 %v3343_v61, %v2775_v28  ;;  %v2155_v32 = vpop.f32.mrb[83].mxu0  ;;  %v2217_v58 = vmax.f32 %v2161_v8, 0.0 }
 0x9a5   :  { %v2156_v16 = vadd.f32 %v2775_v28, %v2155_v32  ;;  %v2215_v31 = vmax.f32 %v2153_v37, 0.0 }
 0x9a6   :  { %v2218_v42 = vmax.f32 %v2164_v9, 0.0 }
 0x9a7   :  { %v2216_v51 = vmax.f32 %v2156_v16, 0.0 }
 0x9a8   :  { %v2232_v35 = vpack.c.bf16 %v2218_v42, %v2217_v58  ;;  %v12_v42 = vstv %s4377_s6 }
 0x9a9   :  { %v2231_v5 = vpack.c.bf16 %v2216_v51, %v2215_v31  ;;  %v3346_v56 = vpop.f32.mrb[84].mxu0  ;;  %13 = vst [vmem:[#allocation2] sm:$0x1] %v12_v42  ;;  %v4253_v31 = vld [vmem:[%s4376_s4 + $0x5] ss:$0 sm:$0xff] }
 0x9aa   :  { %v2177_v6 = vadd.f32 %v3346_v56, %v2775_v28  ;;  %v2168_v15 = vpop.f32.mrb[85].mxu0 }
 0x9ab   :  { %v2169_v63 = vadd.f32 %v2775_v28, %v2168_v15  ;;  %v3347_v13 = vpop.f32.mrb[86].mxu0  ;;  %3372 = vmatprep.mubr.bf16.mxu1 %v2231_v5 }
 0x9ac   :  { %v2180_v21 = vadd.f32 %v3347_v13, %v2775_v28  ;;  %v2171_v20 = vpop.f32.mrb[87].mxu0  ;;  %3373 = vmatmul.mubr.bf16.vlgmr.msra.gmra.mrb[80].mxu1 %v2232_v35  ;;  %v2221_v25 = vmax.f32 %v2177_v6, 0.0  ;;  %v4260_v6 = vld [vmem:[%s4378_s5] ss:$0 sm:$0xff] }
 0x9ad   :  { %v2172_v0 = vadd.f32 %v2775_v28, %v2171_v20  ;;  %v2219_v60 = vmax.f32 %v2169_v63, 0.0 }
 0x9ae   :  { %v2222_v38 = vmax.f32 %v2180_v21, 0.0 }
 0x9af   :  { %v2220_v40 = vmax.f32 %v2172_v0, 0.0 }
 0x9b0   :  { %v2234_v22 = vpack.c.bf16 %v2222_v38, %v2221_v25 }
 0x9b1   :  { %v2233_v29 = vpack.c.bf16 %v2220_v40, %v2219_v60  ;;  %v3350_v59 = vpop.f32.mrb[88].mxu0 }
 0x9b2   :  { %v2193_v30 = vadd.f32 %v3350_v59, %v2775_v28  ;;  %v2184_v62 = vpop.f32.mrb[89].mxu0 }
 0x9b3   :  { %v2185_v3 = vadd.f32 %v2775_v28, %v2184_v62  ;;  %v3351_v41 = vpop.f32.mrb[90].mxu0  ;;  %3376 = vmatprep.mubr.bf16.mxu1 %v2233_v29 }
 0x9b4   :  { %v2196_v48 = vadd.f32 %v3351_v41, %v2775_v28  ;;  %v2187_v11 = vpop.f32.mrb[91].mxu0  ;;  %3377 = vmatmul.mubr.bf16.gmra.mrb[84].mxu1 %v2234_v22  ;;  %v2225_v12 = vmax.f32 %v2193_v30, 0.0 }
 0x9b5   :  { %v2188_v44 = vadd.f32 %v2775_v28, %v2187_v11  ;;  %v2223_v54 = vmax.f32 %v2185_v3, 0.0 }
 0x9b6   :  { %v2226_v55 = vmax.f32 %v2196_v48, 0.0 }
 0x9b7   :  { %v2224_v27 = vmax.f32 %v2188_v44, 0.0 }
 0x9b8   :  { %v2236_v10 = vpack.c.bf16 %v2226_v55, %v2225_v12 }
 0x9b9   :  { %v2235_v33 = vpack.c.bf16 %v2224_v27, %v2223_v54  ;;  %v3354_v49 = vpop.f32.mrb[92].mxu0 }
 0x9ba   :  { %v2209_v36 = vadd.f32 %v3354_v49, %v2775_v28  ;;  %v2200_v14 = vpop.f32.mrb[93].mxu0 }
 0x9bb   :  { %v2201_v1 = vadd.f32 %v2775_v28, %v2200_v14  ;;  %v3355_v24 = vpop.f32.mrb[94].mxu0  ;;  %3380 = vmatprep.mubr.bf16.mxu1 %v2235_v33 }
 0x9bc   :  { %v2212_v39 = vadd.f32 %v3355_v24, %v2775_v28  ;;  %v2203_v8 = vpop.f32.mrb[95].mxu0  ;;  %3381 = vmatmul.mubr.bf16.gmra.mrb[88].mxu1 %v2236_v10  ;;  %v2229_v37 = vmax.f32 %v2209_v36, 0.0 }
 0x9bd   :  { %v2204_v7 = vadd.f32 %v2775_v28, %v2203_v8  ;;  %v2227_v9 = vmax.f32 %v2201_v1, 0.0 }
 0x9be   :  { %v2230_v61 = vmax.f32 %v2212_v39, 0.0 }
 0x9bf   :  { %v2228_v32 = vmax.f32 %v2204_v7, 0.0 }
 0x9c0   :  { %v2238_v16 = vpack.c.bf16 %v2230_v61, %v2229_v37 }
 0x9c1   :  { %v2237_v58 = vpack.c.bf16 %v2228_v32, %v2227_v9 }
 0x9c3   :  { %3384 = vmatprep.mubr.bf16.mxu1 %v2237_v58 }
 0x9c4   :  { %3385 = vmatmul.mubr.bf16.gmra.mrb[92].mxu1 %v2238_v16 }
 0xa7f   :  { %v3374_v51 = vpop.f32.mrb[80].mxu1 }
 0xa80   :  { %v2355_v28 = vadd.f32 %v3374_v51, %v4253_v31  ;;  %v2346_v35 = vpop.f32.mrb[81].mxu1 }
 0xa81   :  { %v2347_v5 = vadd.f32 %v4253_v31, %v2346_v35  ;;  %v3375_v56 = vpop.f32.mrb[82].mxu1 }
 0xa82   :  { %v2358_v15 = vadd.f32 %v3375_v56, %v4253_v31  ;;  %v2349_v63 = vpop.f32.mrb[83].mxu1  ;;  %v2411_v13 = vadd.f32 %v2355_v28, %v4184_v4 }
 0xa83   :  { %v2350_v21 = vadd.f32 %v4253_v31, %v2349_v63  ;;  %v2409_v20 = vadd.f32 %v2347_v5, %v4178_v17 }
 0xa84   :  { %v2412_v0 = vadd.f32 %v2358_v15, %v4175_v43  ;;  %v2434_v25 = vmul.f32 %v4260_v6, %v2411_v13 }
 0xa85   :  { %v2410_v38 = vadd.f32 %v2350_v21, %v4181_v52  ;;  %v2432_v60 = vmul.f32 %v4260_v6, %v2409_v20 }
 0xa86   :  { %2452 = vadd.xlane.f32.xlu1 %v2434_v25  ;;  %v2435_v4 = vmul.f32 %v4260_v6, %v2412_v0 }
 0xa87   :  { %v3378_v40 = vpop.f32.mrb[84].mxu1  ;;  %2448 = vadd.xlane.f32.xlu0 %v2432_v60  ;;  %v2433_v17 = vmul.f32 %v4260_v6, %v2410_v38 }
 0xa88   :  { %v2371_v22 = vadd.f32 %v3378_v40, %v4253_v31  ;;  %v2362_v29 = vpop.f32.mrb[85].mxu1 }
 0xa89   :  { %v2363_v59 = vadd.f32 %v4253_v31, %v2362_v29  ;;  %v3379_v30 = vpop.f32.mrb[86].mxu1 }
 0xa8a   :  { %v2415_v43 = vadd.f32 %v2371_v22, %v4200_v19  ;;  %v2374_v62 = vadd.f32 %v3379_v30, %v4253_v31  ;;  %2454 = vadd.xlane.f32.xlu1 %v2435_v4  ;;  %v2365_v52 = vpop.f32.mrb[87].mxu1 }
 0xa8b   :  { %v2366_v3 = vadd.f32 %v4253_v31, %v2365_v52  ;;  %2450 = vadd.xlane.f32.xlu0 %v2433_v17  ;;  %v2413_v11 = vadd.f32 %v2363_v59, %v4194_v26 }
 0xa8c   :  { %v2416_v41 = vadd.f32 %v2374_v62, %v4191_v23  ;;  %v2438_v48 = vmul.f32 %v4260_v6, %v2415_v43 }
 0xa8d   :  { %v2414_v44 = vadd.f32 %v2366_v3, %v4197_v2  ;;  %v2436_v33 = vmul.f32 %v4260_v6, %v2413_v11 }
 0xa8e   :  { %v2439_v12 = vmul.f32 %v4260_v6, %v2416_v41 }
 0xa8f   :  { %v3382_v55 = vpop.f32.mrb[88].mxu1  ;;  %2460 = vadd.xlane.f32.xlu0 %v2438_v48  ;;  %v2437_v2 = vmul.f32 %v4260_v6, %v2414_v44 }
 0xa90   :  { %v2387_v19 = vadd.f32 %v3382_v55, %v4253_v31  ;;  %2462 = vadd.xlane.f32.xlu1 %v2439_v12  ;;  %v2378_v54 = vpop.f32.mrb[89].mxu1 }
 0xa91   :  { %v2379_v27 = vadd.f32 %v4253_v31, %v2378_v54  ;;  %v3383_v10 = vpop.f32.mrb[90].mxu1 }
 0xa92   :  { %v2419_v23 = vadd.f32 %v2387_v19, %v4216_v47  ;;  %v2390_v49 = vadd.f32 %v3383_v10, %v4253_v31  ;;  %v2381_v26 = vpop.f32.mrb[91].mxu1 }
 0xa93   :  { %v2382_v36 = vadd.f32 %v4253_v31, %v2381_v26  ;;  %2456 = vadd.xlane.f32.xlu0 %v2436_v33  ;;  %v2417_v24 = vadd.f32 %v2379_v27, %v4210_v53 }
 0xa94   :  { %v2420_v14 = vadd.f32 %v2390_v49, %v4207_v34  ;;  %2458 = vadd.xlane.f32.xlu1 %v2437_v2  ;;  %v2442_v1 = vmul.f32 %v4260_v6, %v2419_v23 }
 0xa95   :  { %v2418_v39 = vadd.f32 %v2382_v36, %v4213_v46  ;;  %v2440_v34 = vmul.f32 %v4260_v6, %v2417_v24 }
 0xa96   :  { %v2443_v8 = vmul.f32 %v4260_v6, %v2420_v14 }
 0xa97   :  { %v3386_v47 = vpop.f32.mrb[92].mxu1  ;;  %2468 = vadd.xlane.f32.xlu0 %v2442_v1  ;;  %v2441_v16 = vmul.f32 %v4260_v6, %v2418_v39 }
 0xa98   :  { %v2394_v7 = vpop.f32.mrb[93].mxu1  ;;  %2470 = vadd.xlane.f32.xlu1 %v2443_v8  ;;  %v2403_v37 = vadd.f32 %v3386_v47, %v4253_v31 }
 0xa99   :  { %v2395_v61 = vadd.f32 %v4253_v31, %v2394_v7  ;;  %v3387_v9 = vpop.f32.mrb[94].mxu1 }
 0xa9a   :  { %v2397_v32 = vpop.f32.mrb[95].mxu1  ;;  %v2406_v46 = vadd.f32 %v3387_v9, %v4253_v31  ;;  %v2423_v42 = vadd.f32 %v2403_v37, %v4232_v45 }
 0xa9b   :  { %v2421_v53 = vadd.f32 %v2395_v61, %v4226_v50  ;;  %v2398_v58 = vadd.f32 %v4253_v31, %v2397_v32  ;;  %2464 = vadd.xlane.f32.xlu0 %v2440_v34  ;;  %v2811_v31 = vld [vmem:[#allocation2] ss:$0 sm:$0xff] }
 0xa9c   :  { %2466 = vadd.xlane.f32.xlu1 %v2441_v16  ;;  %v2424_v35 = vadd.f32 %v2406_v46, %v4223_v18  ;;  %v2446_v50 = vmul.f32 %v4260_v6, %v2423_v42 }
 0xa9d   :  { %v2422_v51 = vadd.f32 %v2398_v58, %v4229_v57  ;;  %v2444_v28 = vmul.f32 %v4260_v6, %v2421_v53 }
 0xa9e   :  { %v2447_v56 = vmul.f32 %v4260_v6, %v2424_v35 }
 0xa9f   :  { %2472 = vadd.xlane.f32.xlu0 %v2444_v28  ;;  %v2445_v5 = vmul.f32 %v4260_v6, %v2422_v51 }
 0xaa1   :  { %2474 = vadd.xlane.f32.xlu1 %v2445_v5 }
 0xaa3   :  { %2476 = vadd.xlane.f32.xlu0 %v2446_v50 }
 0xaa5   :  { %2478 = vadd.xlane.f32.xlu1 %v2447_v56 }
 0xb13   :  { %v2453_v15 = vpop.xlane.xlu1 %2452 }
 0xb14   :  { %v2489_v45 = vadd.f32 %v2811_v31, %v2453_v15  ;;  %v2449_v63 = vpop.xlane.xlu0 %2448 }
 0xb15   :  { %v2487_v57 = vadd.f32 %v2811_v31, %v2449_v63 }
 0xb16   :  { %2506 = vst.msk [vmem:[%s4379_s7 + $0x10] sm:$0xff] %vm2503_vm0, %v2489_v45 }
 0xb17   :  { %2504 = vst.msk [vmem:[%s4379_s7] sm:$0xff] %vm2503_vm0, %v2487_v57  ;;  %v2455_v18 = vpop.xlane.xlu1 %2454 }
 0xb18   :  { %v2490_v13 = vadd.f32 %v2811_v31, %v2455_v18  ;;  %v2451_v6 = vpop.xlane.xlu0 %2450 }
 0xb19   :  { %v2488_v21 = vadd.f32 %v2811_v31, %v2451_v6 }
 0xb1a   :  { %2507 = vst.msk [vmem:[%s4379_s7 + $0x18] sm:$0xff] %vm2503_vm0, %v2490_v13 }
 0xb1b   :  { %2505 = vst.msk [vmem:[%s4379_s7 + $0x8] sm:$0xff] %vm2503_vm0, %v2488_v21 }
 0xb1c   :  { %v2461_v20 = vpop.xlane.xlu0 %2460 }
 0xb1d   :  { %v2493_v0 = vadd.f32 %v2811_v31, %v2461_v20  ;;  %v2463_v25 = vpop.xlane.xlu1 %2462 }
 0xb1e   :  { %v2494_v38 = vadd.f32 %v2811_v31, %v2463_v25 }
 0xb1f   :  { %2510 = vst.msk [vmem:[%s4379_s7 + $0x30] sm:$0xff] %vm2503_vm0, %v2493_v0 }
 0xb20   :  { %2511 = vst.msk [vmem:[%s4379_s7 + $0x38] sm:$0xff] %vm2503_vm0, %v2494_v38  ;;  %v2457_v60 = vpop.xlane.xlu0 %2456 }
 0xb21   :  { %v2491_v40 = vadd.f32 %v2811_v31, %v2457_v60  ;;  %v2459_v22 = vpop.xlane.xlu1 %2458 }
 0xb22   :  { %v2492_v29 = vadd.f32 %v2811_v31, %v2459_v22 }
 0xb23   :  { %2508 = vst.msk [vmem:[%s4379_s7 + $0x20] sm:$0xff] %vm2503_vm0, %v2491_v40 }
 0xb24   :  { %2509 = vst.msk [vmem:[%s4379_s7 + $0x28] sm:$0xff] %vm2503_vm0, %v2492_v29  ;;  %v2469_v4 = vpop.xlane.xlu0 %2468 }
 0xb25   :  { %v2497_v59 = vadd.f32 %v2811_v31, %v2469_v4  ;;  %v2471_v30 = vpop.xlane.xlu1 %2470 }
 0xb26   :  { %v2498_v17 = vadd.f32 %v2811_v31, %v2471_v30 }
 0xb27   :  { %2514 = vst.msk [vmem:[%s4379_s7 + $0x50] sm:$0xff] %vm2503_vm0, %v2497_v59 }
 0xb28   :  { %2515 = vst.msk [vmem:[%s4379_s7 + $0x58] sm:$0xff] %vm2503_vm0, %v2498_v17  ;;  %v2465_v43 = vpop.xlane.xlu0 %2464 }
 0xb29   :  { %v2495_v62 = vadd.f32 %v2811_v31, %v2465_v43  ;;  %v2467_v52 = vpop.xlane.xlu1 %2466 }
 0xb2a   :  { %v2496_v3 = vadd.f32 %v2811_v31, %v2467_v52 }
 0xb2b   :  { %2512 = vst.msk [vmem:[%s4379_s7 + $0x40] sm:$0xff] %vm2503_vm0, %v2495_v62 }
 0xb2c   :  { %2513 = vst.msk [vmem:[%s4379_s7 + $0x48] sm:$0xff] %vm2503_vm0, %v2496_v3  ;;  %v2473_v41 = vpop.xlane.xlu0 %2472 }
 0xb2d   :  { %v2499_v48 = vadd.f32 %v2811_v31, %v2473_v41 }
 0xb2e   :  { %v2475_v11 = vpop.xlane.xlu1 %2474 }
 0xb2f   :  { %2516 = vst.msk [vmem:[%s4379_s7 + $0x60] sm:$0xff] %vm2503_vm0, %v2499_v48  ;;  %v2500_v44 = vadd.f32 %v2811_v31, %v2475_v11 }
 0xb30   :  { %v2477_v12 = vpop.xlane.xlu0 %2476 }
 0xb31   :  { %2517 = vst.msk [vmem:[%s4379_s7 + $0x68] sm:$0xff] %vm2503_vm0, %v2500_v44  ;;  %v2501_v55 = vadd.f32 %v2811_v31, %v2477_v12 }
 0xb32   :  { %v2479_v19 = vpop.xlane.xlu1 %2478 }
 0xb33   :  { %2518 = vst.msk [vmem:[%s4379_s7 + $0x70] sm:$0xff] %vm2503_vm0, %v2501_v55  ;;  %v2502_v54 = vadd.f32 %v2811_v31, %v2479_v19 }
 0xb35   :  { %2519 = vst.msk [vmem:[%s4379_s7 + $0x78] sm:$0xff] %vm2503_vm0, %v2502_v54 }

</bundles_post_ra>
